<compile_context>
chip_gen: v7x
topology: tpu7x:2x2x1
jax: 0.10.0
libtpu: 0.0.40
codegen_flags: <defaults>
</compile_context>

<pallas_src>
import math

import numpy as np
import jax
import jax.numpy as jnp
from jax import lax
from jax.experimental import pallas as pl
from jax.experimental.pallas import tpu as pltpu

# ----- Configuration: Bottle2neck(inplanes=32, planes=32, kernel_size=3, dilation=2, scale=8) -----
B = 4
T = 64
INPLANES = 32
PLANES = 32
K = 3
DIL = 2
SCALE = 8
WIDTH = int(math.floor(PLANES / SCALE))   # 4
WS = WIDTH * SCALE                        # 32
NUMS = SCALE - 1                          # 7
PAD = (K // 2) * DIL                      # 2
SE_BNECK = 128
BN_EPS = 1e-5

# kernel-internal padded layout
WPAD = 8                                  # each split zero-padded 4 -> 8 rows (f32 sublane granule)
HP = SCALE * WPAD                         # 64 padded channels after conv1
BT = B * T                                # batch folded onto the lane (time) axis
LT = 128                                  # lane-tile width per grid step (128 good for v5e; raise for v6e/v7x)
B_TILE = LT // T                          # complete batch segments per lane tile
N_TILES = BT // LT
O3 = HP + NUMS * WPAD                     # conv3 parameter offset in pvec (120)
OB1 = O3 + PLANES                         # SE bias1 offset (152)
OB2 = OB1 + SE_BNECK                      # SE bias2 offset (280)
PTOT = OB2 + PLANES                       # 312 packed per-channel parameter rows

assert BT % LT == 0 and LT % T == 0, "lane tile must hold whole batch segments"
assert INPLANES == PLANES, "residual add requires inplanes == planes"


# ------------------------------ Pallas kernel ------------------------------
def bottle2neck_kernel(x_ref, wa_ref, cw_ref, w3_ref, sw2_ref, pv_ref, cst_ref, out_ref):
    f32, bf16 = jnp.float32, jnp.bfloat16

    x = x_ref[...]                                   # (INPLANES, LT) f32
    bias_v = pv_ref[0]                               # (PTOT, 1) packed biases
    scale_v = pv_ref[1]                              # (PTOT, 1) folded BN scales
    shift_v = pv_ref[2]                              # (PTOT, 1) folded BN shifts
    cst = cst_ref[...]                               # (K + B_TILE, LT): tap masks + segment rows
    seg = cst[K:K + B_TILE, :]                       # (B_TILE, LT) 0/1 segment indicator

    # ---- conv1 (1x1) -> ReLU -> BN1 ; rows padded so each split is 8-row aligned ----
    h = jnp.dot(wa_ref[0:HP, :], x.astype(bf16), preferred_element_type=f32) + bias_v[0:HP]
    h = jnp.maximum(h, 0.0) * scale_v[0:HP] + shift_v[0:HP]                     # (HP, LT)

    # ---- Res2Net hierarchical branches (serial chain) ----
    parts = []
    sp = None
    for i in range(NUMS):
        chunk = h[i * WPAD:(i + 1) * WPAD, :]                                   # aligned slice
        sp = chunk if i == 0 else sp + chunk
        # K dilated taps fused into one matmul: stack masked lane-rotated views.
        views = []
        for j in range(K):
            d = j * DIL - PAD
            if d == 0:
                views.append(sp)
            else:
                v = pltpu.roll(sp, shift=(-d) % LT, axis=1)                     # XLU lane rotate
                views.append(v * cst[j:j + 1, :])                               # mask cross-segment taps
        xs = jnp.concatenate(views, axis=0)                                     # (K*WPAD, LT)
        base = HP + i * WPAD
        sp = jnp.dot(cw_ref[i].astype(bf16), xs.astype(bf16),
                     preferred_element_type=f32) + bias_v[base:base + WPAD]
        sp = jnp.maximum(sp, 0.0) * scale_v[base:base + WPAD] + shift_v[base:base + WPAD]
        parts.append(sp)
    parts.append(h[NUMS * WPAD:, :])                                            # unprocessed last split
    cat = jnp.concatenate(parts, axis=0)                                        # (HP, LT)

    # ---- conv3 (1x1) -> ReLU -> BN3 ----
    y = jnp.dot(w3_ref[...], cat.astype(bf16), preferred_element_type=f32) + bias_v[O3:O3 + PLANES]
    y = jnp.maximum(y, 0.0) * scale_v[O3:O3 + PLANES] + shift_v[O3:O3 + PLANES]  # (PLANES, LT)

    # ---- SE: segment mean-pool and gate broadcast done as matmuls vs the segment matrix ----
    pooled = lax.dot_general(y, seg, (((1,), (1,)), ((), ())),
                             preferred_element_type=f32) * (1.0 / T)            # (PLANES, B_TILE)
    z = jnp.dot(wa_ref[HP:HP + SE_BNECK, :], pooled.astype(bf16),
                preferred_element_type=f32) + bias_v[OB1:OB1 + SE_BNECK]
    z = jnp.maximum(z, 0.0)                                                     # (SE_BNECK, B_TILE)
    g = jnp.dot(sw2_ref[...], z.astype(bf16),
                preferred_element_type=f32) + bias_v[OB2:OB2 + PLANES]
    g = 1.0 / (1.0 + jnp.exp(-g))                                               # (PLANES, B_TILE)
    gate = jnp.dot(g, seg, preferred_element_type=f32)                          # (PLANES, LT)

    out_ref[...] = (y * gate + x).astype(out_ref.dtype)                         # SE scale + residual


# ------------------------------ wrapper ------------------------------
@jax.jit
def bottle2neck_forward(x, kp):
    """x: (B, INPLANES, T) -> (B, PLANES, T); kp: packed kernel params."""
    x2d = jnp.transpose(x, (1, 0, 2)).reshape(INPLANES, BT)   # channels on sublanes, B*T on lanes
    out2d = pl.pallas_call(
        bottle2neck_kernel,
        out_shape=jax.ShapeDtypeStruct((PLANES, BT), jnp.float32),
        grid_spec=pltpu.PrefetchScalarGridSpec(
            num_scalar_prefetch=0,
            grid=(N_TILES,),
            in_specs=[
                pl.BlockSpec((INPLANES, LT), lambda i: (0, i)),                 # x: lane tiled
                pl.BlockSpec((HP + SE_BNECK, INPLANES), lambda i: (0, 0)),      # w1 + se_w1 blob
                pl.BlockSpec((NUMS, WPAD, K * WPAD), lambda i: (0, 0, 0)),      # fused branch weights
                pl.BlockSpec((PLANES, HP), lambda i: (0, 0)),                   # w3
                pl.BlockSpec((PLANES, SE_BNECK), lambda i: (0, 0)),             # se_w2
                pl.BlockSpec((3, PTOT, 1), lambda i: (0, 0, 0)),                # packed bias/scale/shift
                pl.BlockSpec((K + B_TILE, LT), lambda i: (0, 0)),               # tap masks + seg matrix
            ],
            out_specs=pl.BlockSpec((PLANES, LT), lambda i: (0, i)),
        ),
        compiler_params=pltpu.CompilerParams(dimension_semantics=("parallel",)),
        input_output_aliases={0: 0},                                            # write back over x2d
    )(x2d, kp["wa"], kp["cwf"], kp["w3p"], kp["se_w2"], kp["pvec"], kp["consts"])
    return jnp.transpose(out2d.reshape(PLANES, B, T), (1, 0, 2))


# ------------------------------ host-side constants ------------------------------
def make_consts():
    """Rows 0..K-1: dilated-tap validity masks; rows K..: per-tile batch-segment indicators."""
    col = np.arange(LT)
    tpos = col % T
    rows = []
    for j in range(K):
        d = j * DIL - PAD
        rows.append(((tpos + d >= 0) & (tpos + d < T)).astype(np.float32))
    for s in range(B_TILE):
        rows.append(((col >= s * T) & (col < (s + 1) * T)).astype(np.float32))
    return jnp.asarray(np.stack(rows, axis=0))                                  # (K + B_TILE, LT)


# ------------------------------ parameter packing (logical -> kernel layout) ------------------------------
def _pad_splits(a):
    """Zero-pad each WIDTH-row split to WPAD rows: (SCALE*WIDTH, ...) -> (SCALE*WPAD, ...)."""
    a = a.reshape(SCALE, WIDTH, *a.shape[1:])
    pads = [(0, 0), (0, WPAD - WIDTH)] + [(0, 0)] * (a.ndim - 2)
    a = jnp.pad(a, pads)
    return a.reshape(SCALE * WPAD, *a.shape[2:])


def _pad_branch_vec(a):
    """(NUMS, WIDTH, 1) -> (NUMS*WPAD, 1) with zero padding per branch."""
    return jnp.pad(a, ((0, 0), (0, WPAD - WIDTH), (0, 0))).reshape(NUMS * WPAD, 1)


def pack_params(p):
    bf16 = jnp.bfloat16

    # conv1 (rows 0:HP) and SE squeeze (rows HP:HP+SE_BNECK) share the 32-column contraction.
    w1p = _pad_splits(p["w1"])                                                  # (HP, INPLANES)
    wa = jnp.concatenate([w1p, p["se_w1"]], axis=0).astype(bf16)                # (192, 32)

    cw = jnp.pad(p["convs_w"],
                 ((0, 0), (0, 0), (0, WPAD - WIDTH), (0, WPAD - WIDTH)))        # (NUMS, K, WPAD, WPAD)
    cwf = jnp.transpose(cw, (0, 2, 1, 3)).reshape(NUMS, WPAD, K * WPAD)         # fused tap weights (f32)

    w3p = jnp.pad(p["w3"].reshape(PLANES, SCALE, WIDTH),
                  ((0, 0), (0, 0), (0, WPAD - WIDTH))).reshape(PLANES, HP).astype(bf16)

    # All per-channel vectors packed into one (3, PTOT, 1) array (padded rows stay exactly zero:
    # required so the padded WPAD rows remain zero through conv1/ReLU/affine).
    zeros_se = jnp.zeros((SE_BNECK + PLANES, 1), jnp.float32)
    pvec = jnp.stack([
        jnp.concatenate([_pad_splits(p["b1"]), _pad_branch_vec(p["convs_b"]),
                         p["b3"], p["se_b1"], p["se_b2"]], axis=0),
        jnp.concatenate([_pad_splits(p["bn1_scale"]), _pad_branch_vec(p["bns_scale"]),
                         p["bn3_scale"], zeros_se], axis=0),
        jnp.concatenate([_pad_splits(p["bn1_shift"]), _pad_branch_vec(p["bns_shift"]),
                         p["bn3_shift"], zeros_se], axis=0),
    ], axis=0)                                                                  # (3, PTOT, 1)

    return {"wa": wa, "cwf": cwf, "w3p": w3p, "se_w2": p["se_w2"].astype(bf16),
            "pvec": pvec, "consts": make_consts()}


# ------------------------------ logical parameters (PyTorch semantics) ------------------------------
def init_params(key):
    keys = iter(jax.random.split(key, 32))

    def nrm(shape, scale=0.1):
        return scale * jax.random.normal(next(keys), shape, dtype=jnp.float32)

    def bn_params(shape):
        gamma = 1.0 + nrm(shape)
        beta = nrm(shape)
        mean = nrm(shape)
        var = 1.0 + 0.1 * jnp.abs(jax.random.normal(next(keys), shape, dtype=jnp.float32))
        scale = gamma / jnp.sqrt(var + BN_EPS)
        shift = beta - mean * scale
        return scale, shift

    p = {}
    p["w1"] = nrm((WS, INPLANES))
    p["b1"] = nrm((WS, 1))
    p["bn1_scale"], p["bn1_shift"] = bn_params((WS, 1))
    p["convs_w"] = nrm((NUMS, K, WIDTH, WIDTH))
    p["convs_b"] = nrm((NUMS, WIDTH, 1))
    p["bns_scale"], p["bns_shift"] = bn_params((NUMS, WIDTH, 1))
    p["w3"] = nrm((PLANES, WS))
    p["b3"] = nrm((PLANES, 1))
    p["bn3_scale"], p["bn3_shift"] = bn_params((PLANES, 1))
    p["se_w1"] = nrm((SE_BNECK, PLANES))
    p["se_b1"] = nrm((SE_BNECK, 1))
    p["se_w2"] = nrm((PLANES, SE_BNECK))
    p["se_b2"] = nrm((PLANES, 1))
    return p


# ------------------------------ pure-JAX reference ------------------------------
def reference(x, p):
    h = jnp.einsum("oc,bct->bot", p["w1"], x) + p["b1"][None]
    h = jnp.maximum(h, 0.0)
    h = h * p["bn1_scale"][None] + p["bn1_shift"][None]
    outs = []
    sp = None
    for i in range(NUMS):
        chunk = h[:, i * WIDTH:(i + 1) * WIDTH, :]
        sp = chunk if i == 0 else sp + chunk
        sp_pad = jnp.pad(sp, ((0, 0), (0, 0), (PAD, PAD)))
        acc = jnp.zeros((B, WIDTH, T), jnp.float32)
        for j in range(K):
            acc = acc + jnp.einsum("oc,bct->bot", p["convs_w"][i, j],
                                   sp_pad[:, :, j * DIL:j * DIL + T])
        sp = acc + p["convs_b"][i][None]
        sp = jnp.maximum(sp, 0.0)
        sp = sp * p["bns_scale"][i][None] + p["bns_shift"][i][None]
        outs.append(sp)
    outs.append(h[:, NUMS * WIDTH:, :])
    cat = jnp.concatenate(outs, axis=1)
    y = jnp.einsum("oc,bct->bot", p["w3"], cat) + p["b3"][None]
    y = jnp.maximum(y, 0.0)
    y = y * p["bn3_scale"][None] + p["bn3_shift"][None]
    s = jnp.mean(y, axis=-1, keepdims=True)
    s = jnp.einsum("oc,bcl->bol", p["se_w1"], s) + p["se_b1"][None]
    s = jnp.maximum(s, 0.0)
    s = jnp.einsum("oc,bcl->bol", p["se_w2"], s) + p["se_b2"][None]
    s = jax.nn.sigmoid(s)
    return y * s + x


if __name__ == "__main__":
    key = jax.random.PRNGKey(0)
    kx, kprm = jax.random.split(key)
    x = jax.random.normal(kx, (B, INPLANES, T), dtype=jnp.float32)
    params = init_params(kprm)
    kernel_params = pack_params(params)

    out = bottle2neck_forward(x, kernel_params)
    jax.block_until_ready(out)

    ref = reference(x, params)
    # tolerance accounts for bf16 MXU operands (f32 accumulate) in the kernel
    np.testing.assert_allclose(np.asarray(out), np.asarray(ref), rtol=2e-2, atol=2e-2)
    print("KERNEL_OK")
</pallas_src>

<mosaic_0001>
module attributes {stable_mosaic.version = 11 : i64} {
  func.func @bottle2neck_kernel(%arg0: i32, %arg1: memref<32x128xf32, #tpu.memory_space<vmem>>, %arg2: memref<192x32xbf16, #tpu.memory_space<vmem>>, %arg3: memref<7x8x24xf32, #tpu.memory_space<vmem>>, %arg4: memref<32x64xbf16, #tpu.memory_space<vmem>>, %arg5: memref<32x128xbf16, #tpu.memory_space<vmem>>, %arg6: memref<3x312x1xf32, #tpu.memory_space<vmem>>, %arg7: memref<5x128xf32, #tpu.memory_space<vmem>>, %arg8: memref<32x128xf32, #tpu.memory_space<vmem>>) attributes {dimension_semantics = [#tpu.dimension_semantics<parallel>], iteration_bounds = array<i64: 2>, scalar_prefetch = 0 : i64, scratch_operands = 0 : i64, tpu.core_type = #tpu.core_type<tc>, window_params = [{transform_indices = @transform_0, window_bounds = array<i64: 32, 128>}, {pipeline_mode = #tpu.pipeline_mode<synchronous>, transform_indices = @transform_1, window_bounds = array<i64: 192, 32>}, {pipeline_mode = #tpu.pipeline_mode<synchronous>, transform_indices = @transform_2, window_bounds = array<i64: 7, 8, 24>}, {pipeline_mode = #tpu.pipeline_mode<synchronous>, transform_indices = @transform_3, window_bounds = array<i64: 32, 64>}, {pipeline_mode = #tpu.pipeline_mode<synchronous>, transform_indices = @transform_4, window_bounds = array<i64: 32, 128>}, {pipeline_mode = #tpu.pipeline_mode<synchronous>, transform_indices = @transform_5, window_bounds = array<i64: 3, 312, 1>}, {pipeline_mode = #tpu.pipeline_mode<synchronous>, transform_indices = @transform_6, window_bounds = array<i64: 5, 128>}, {transform_indices = @transform_7, window_bounds = array<i64: 32, 128>}]} {
    %c0 = arith.constant 0 : index
    %c0_0 = arith.constant 0 : index
    %0 = vector.load %arg1[%c0, %c0_0] : memref<32x128xf32, #tpu.memory_space<vmem>>, vector<32x128xf32>
    %c0_1 = arith.constant 0 : index
    %c0_2 = arith.constant 0 : index
    %c0_3 = arith.constant 0 : index
    %1 = vector.load %arg6[%c0_1, %c0_2, %c0_3] : memref<3x312x1xf32, #tpu.memory_space<vmem>>, vector<1x312x1xf32>
    %2 = vector.shape_cast %1 : vector<1x312x1xf32> to vector<312x1xf32>
    %c1 = arith.constant 1 : index
    %c0_4 = arith.constant 0 : index
    %c0_5 = arith.constant 0 : index
    %3 = vector.load %arg6[%c1, %c0_4, %c0_5] : memref<3x312x1xf32, #tpu.memory_space<vmem>>, vector<1x312x1xf32>
    %4 = vector.shape_cast %3 : vector<1x312x1xf32> to vector<312x1xf32>
    %c2 = arith.constant 2 : index
    %c0_6 = arith.constant 0 : index
    %c0_7 = arith.constant 0 : index
    %5 = vector.load %arg6[%c2, %c0_6, %c0_7] : memref<3x312x1xf32, #tpu.memory_space<vmem>>, vector<1x312x1xf32>
    %6 = vector.shape_cast %5 : vector<1x312x1xf32> to vector<312x1xf32>
    %c0_8 = arith.constant 0 : index
    %c0_9 = arith.constant 0 : index
    %7 = vector.load %arg7[%c0_8, %c0_9] : memref<5x128xf32, #tpu.memory_space<vmem>>, vector<5x128xf32>
    %8 = vector.extract_strided_slice %7 {offsets = [3, 0], sizes = [2, 128], strides = [1, 1]} : vector<5x128xf32> to vector<2x128xf32>
    %c0_10 = arith.constant 0 : index
    %c0_11 = arith.constant 0 : index
    %9 = vector.load %arg2[%c0_10, %c0_11] : memref<192x32xbf16, #tpu.memory_space<vmem>>, vector<64x32xbf16>
    %10 = arith.truncf %0 : vector<32x128xf32> to vector<32x128xbf16>
    %cst = arith.constant dense<0.000000e+00> : vector<64x128xf32>
    %11 = tpu.matmul %9, %10, %cst {dimension_numbers = #tpu.dot_dimension_numbers<[1], [0], [0], [1], [0, 0, 1, 1], [], []>} : vector<64x32xbf16>, vector<32x128xbf16>, vector<64x128xf32> -> vector<64x128xf32>
    %12 = vector.extract_strided_slice %2 {offsets = [0, 0], sizes = [64, 1], strides = [1, 1]} : vector<312x1xf32> to vector<64x1xf32>
    %13 = vector.broadcast %12 : vector<64x1xf32> to vector<64x128xf32>
    %14 = arith.addf %11, %13 : vector<64x128xf32>
    %cst_12 = arith.constant 0.000000e+00 : f32
    %15 = vector.broadcast %cst_12 : f32 to vector<64x128xf32>
    %16 = arith.maximumf %14, %15 : vector<64x128xf32>
    %17 = vector.extract_strided_slice %4 {offsets = [0, 0], sizes = [64, 1], strides = [1, 1]} : vector<312x1xf32> to vector<64x1xf32>
    %18 = vector.broadcast %17 : vector<64x1xf32> to vector<64x128xf32>
    %19 = arith.mulf %16, %18 : vector<64x128xf32>
    %20 = vector.extract_strided_slice %6 {offsets = [0, 0], sizes = [64, 1], strides = [1, 1]} : vector<312x1xf32> to vector<64x1xf32>
    %21 = vector.broadcast %20 : vector<64x1xf32> to vector<64x128xf32>
    %22 = arith.addf %19, %21 : vector<64x128xf32>
    %23 = vector.extract_strided_slice %22 {offsets = [0, 0], sizes = [8, 128], strides = [1, 1]} : vector<64x128xf32> to vector<8x128xf32>
    %c2_i32 = arith.constant 2 : i32
    %24 = tpu.dynamic_rotate %23 by %c2_i32 dim 1 : vector<8x128xf32>, i32 -> vector<8x128xf32>
    %25 = vector.extract_strided_slice %7 {offsets = [0, 0], sizes = [1, 128], strides = [1, 1]} : vector<5x128xf32> to vector<1x128xf32>
    %26 = vector.broadcast %25 : vector<1x128xf32> to vector<8x128xf32>
    %27 = arith.mulf %24, %26 : vector<8x128xf32>
    %c126_i32 = arith.constant 126 : i32
    %28 = tpu.dynamic_rotate %23 by %c126_i32 dim 1 : vector<8x128xf32>, i32 -> vector<8x128xf32>
    %29 = vector.extract_strided_slice %7 {offsets = [2, 0], sizes = [1, 128], strides = [1, 1]} : vector<5x128xf32> to vector<1x128xf32>
    %30 = vector.broadcast %29 : vector<1x128xf32> to vector<8x128xf32>
    %31 = arith.mulf %28, %30 : vector<8x128xf32>
    %32 = tpu.concatenate %27, %23, %31 in 0 : vector<8x128xf32>, vector<8x128xf32>, vector<8x128xf32> -> vector<24x128xf32>
    %c0_13 = arith.constant 0 : index
    %c0_14 = arith.constant 0 : index
    %c0_15 = arith.constant 0 : index
    %33 = vector.load %arg3[%c0_13, %c0_14, %c0_15] : memref<7x8x24xf32, #tpu.memory_space<vmem>>, vector<1x8x24xf32>
    %34 = vector.shape_cast %33 : vector<1x8x24xf32> to vector<8x24xf32>
    %35 = arith.truncf %34 : vector<8x24xf32> to vector<8x24xbf16>
    %36 = arith.truncf %32 : vector<24x128xf32> to vector<24x128xbf16>
    %cst_16 = arith.constant dense<0.000000e+00> : vector<8x128xf32>
    %37 = tpu.matmul %35, %36, %cst_16 {dimension_numbers = #tpu.dot_dimension_numbers<[1], [0], [0], [1], [0, 0, 1, 1], [], []>} : vector<8x24xbf16>, vector<24x128xbf16>, vector<8x128xf32> -> vector<8x128xf32>
    %38 = vector.extract_strided_slice %2 {offsets = [64, 0], sizes = [8, 1], strides = [1, 1]} : vector<312x1xf32> to vector<8x1xf32>
    %39 = vector.broadcast %38 : vector<8x1xf32> to vector<8x128xf32>
    %40 = arith.addf %37, %39 : vector<8x128xf32>
    %cst_17 = arith.constant 0.000000e+00 : f32
    %41 = vector.broadcast %cst_17 : f32 to vector<8x128xf32>
    %42 = arith.maximumf %40, %41 : vector<8x128xf32>
    %43 = vector.extract_strided_slice %4 {offsets = [64, 0], sizes = [8, 1], strides = [1, 1]} : vector<312x1xf32> to vector<8x1xf32>
    %44 = vector.broadcast %43 : vector<8x1xf32> to vector<8x128xf32>
    %45 = arith.mulf %42, %44 : vector<8x128xf32>
    %46 = vector.extract_strided_slice %6 {offsets = [64, 0], sizes = [8, 1], strides = [1, 1]} : vector<312x1xf32> to vector<8x1xf32>
    %47 = vector.broadcast %46 : vector<8x1xf32> to vector<8x128xf32>
    %48 = arith.addf %45, %47 : vector<8x128xf32>
    %49 = vector.extract_strided_slice %22 {offsets = [8, 0], sizes = [8, 128], strides = [1, 1]} : vector<64x128xf32> to vector<8x128xf32>
    %50 = arith.addf %48, %49 : vector<8x128xf32>
    %c2_i32_18 = arith.constant 2 : i32
    %51 = tpu.dynamic_rotate %50 by %c2_i32_18 dim 1 : vector<8x128xf32>, i32 -> vector<8x128xf32>
    %52 = vector.extract_strided_slice %7 {offsets = [0, 0], sizes = [1, 128], strides = [1, 1]} : vector<5x128xf32> to vector<1x128xf32>
    %53 = vector.broadcast %52 : vector<1x128xf32> to vector<8x128xf32>
    %54 = arith.mulf %51, %53 : vector<8x128xf32>
    %c126_i32_19 = arith.constant 126 : i32
    %55 = tpu.dynamic_rotate %50 by %c126_i32_19 dim 1 : vector<8x128xf32>, i32 -> vector<8x128xf32>
    %56 = vector.extract_strided_slice %7 {offsets = [2, 0], sizes = [1, 128], strides = [1, 1]} : vector<5x128xf32> to vector<1x128xf32>
    %57 = vector.broadcast %56 : vector<1x128xf32> to vector<8x128xf32>
    %58 = arith.mulf %55, %57 : vector<8x128xf32>
    %59 = tpu.concatenate %54, %50, %58 in 0 : vector<8x128xf32>, vector<8x128xf32>, vector<8x128xf32> -> vector<24x128xf32>
    %c1_20 = arith.constant 1 : index
    %c0_21 = arith.constant 0 : index
    %c0_22 = arith.constant 0 : index
    %60 = vector.load %arg3[%c1_20, %c0_21, %c0_22] : memref<7x8x24xf32, #tpu.memory_space<vmem>>, vector<1x8x24xf32>
    %61 = vector.shape_cast %60 : vector<1x8x24xf32> to vector<8x24xf32>
    %62 = arith.truncf %61 : vector<8x24xf32> to vector<8x24xbf16>
    %63 = arith.truncf %59 : vector<24x128xf32> to vector<24x128xbf16>
    %cst_23 = arith.constant dense<0.000000e+00> : vector<8x128xf32>
    %64 = tpu.matmul %62, %63, %cst_23 {dimension_numbers = #tpu.dot_dimension_numbers<[1], [0], [0], [1], [0, 0, 1, 1], [], []>} : vector<8x24xbf16>, vector<24x128xbf16>, vector<8x128xf32> -> vector<8x128xf32>
    %65 = vector.extract_strided_slice %2 {offsets = [72, 0], sizes = [8, 1], strides = [1, 1]} : vector<312x1xf32> to vector<8x1xf32>
    %66 = vector.broadcast %65 : vector<8x1xf32> to vector<8x128xf32>
    %67 = arith.addf %64, %66 : vector<8x128xf32>
    %cst_24 = arith.constant 0.000000e+00 : f32
    %68 = vector.broadcast %cst_24 : f32 to vector<8x128xf32>
    %69 = arith.maximumf %67, %68 : vector<8x128xf32>
    %70 = vector.extract_strided_slice %4 {offsets = [72, 0], sizes = [8, 1], strides = [1, 1]} : vector<312x1xf32> to vector<8x1xf32>
    %71 = vector.broadcast %70 : vector<8x1xf32> to vector<8x128xf32>
    %72 = arith.mulf %69, %71 : vector<8x128xf32>
    %73 = vector.extract_strided_slice %6 {offsets = [72, 0], sizes = [8, 1], strides = [1, 1]} : vector<312x1xf32> to vector<8x1xf32>
    %74 = vector.broadcast %73 : vector<8x1xf32> to vector<8x128xf32>
    %75 = arith.addf %72, %74 : vector<8x128xf32>
    %76 = vector.extract_strided_slice %22 {offsets = [16, 0], sizes = [8, 128], strides = [1, 1]} : vector<64x128xf32> to vector<8x128xf32>
    %77 = arith.addf %75, %76 : vector<8x128xf32>
    %c2_i32_25 = arith.constant 2 : i32
    %78 = tpu.dynamic_rotate %77 by %c2_i32_25 dim 1 : vector<8x128xf32>, i32 -> vector<8x128xf32>
    %79 = vector.extract_strided_slice %7 {offsets = [0, 0], sizes = [1, 128], strides = [1, 1]} : vector<5x128xf32> to vector<1x128xf32>
    %80 = vector.broadcast %79 : vector<1x128xf32> to vector<8x128xf32>
    %81 = arith.mulf %78, %80 : vector<8x128xf32>
    %c126_i32_26 = arith.constant 126 : i32
    %82 = tpu.dynamic_rotate %77 by %c126_i32_26 dim 1 : vector<8x128xf32>, i32 -> vector<8x128xf32>
    %83 = vector.extract_strided_slice %7 {offsets = [2, 0], sizes = [1, 128], strides = [1, 1]} : vector<5x128xf32> to vector<1x128xf32>
    %84 = vector.broadcast %83 : vector<1x128xf32> to vector<8x128xf32>
    %85 = arith.mulf %82, %84 : vector<8x128xf32>
    %86 = tpu.concatenate %81, %77, %85 in 0 : vector<8x128xf32>, vector<8x128xf32>, vector<8x128xf32> -> vector<24x128xf32>
    %c2_27 = arith.constant 2 : index
    %c0_28 = arith.constant 0 : index
    %c0_29 = arith.constant 0 : index
    %87 = vector.load %arg3[%c2_27, %c0_28, %c0_29] : memref<7x8x24xf32, #tpu.memory_space<vmem>>, vector<1x8x24xf32>
    %88 = vector.shape_cast %87 : vector<1x8x24xf32> to vector<8x24xf32>
    %89 = arith.truncf %88 : vector<8x24xf32> to vector<8x24xbf16>
    %90 = arith.truncf %86 : vector<24x128xf32> to vector<24x128xbf16>
    %cst_30 = arith.constant dense<0.000000e+00> : vector<8x128xf32>
    %91 = tpu.matmul %89, %90, %cst_30 {dimension_numbers = #tpu.dot_dimension_numbers<[1], [0], [0], [1], [0, 0, 1, 1], [], []>} : vector<8x24xbf16>, vector<24x128xbf16>, vector<8x128xf32> -> vector<8x128xf32>
    %92 = vector.extract_strided_slice %2 {offsets = [80, 0], sizes = [8, 1], strides = [1, 1]} : vector<312x1xf32> to vector<8x1xf32>
    %93 = vector.broadcast %92 : vector<8x1xf32> to vector<8x128xf32>
    %94 = arith.addf %91, %93 : vector<8x128xf32>
    %cst_31 = arith.constant 0.000000e+00 : f32
    %95 = vector.broadcast %cst_31 : f32 to vector<8x128xf32>
    %96 = arith.maximumf %94, %95 : vector<8x128xf32>
    %97 = vector.extract_strided_slice %4 {offsets = [80, 0], sizes = [8, 1], strides = [1, 1]} : vector<312x1xf32> to vector<8x1xf32>
    %98 = vector.broadcast %97 : vector<8x1xf32> to vector<8x128xf32>
    %99 = arith.mulf %96, %98 : vector<8x128xf32>
    %100 = vector.extract_strided_slice %6 {offsets = [80, 0], sizes = [8, 1], strides = [1, 1]} : vector<312x1xf32> to vector<8x1xf32>
    %101 = vector.broadcast %100 : vector<8x1xf32> to vector<8x128xf32>
    %102 = arith.addf %99, %101 : vector<8x128xf32>
    %103 = vector.extract_strided_slice %22 {offsets = [24, 0], sizes = [8, 128], strides = [1, 1]} : vector<64x128xf32> to vector<8x128xf32>
    %104 = arith.addf %102, %103 : vector<8x128xf32>
    %c2_i32_32 = arith.constant 2 : i32
    %105 = tpu.dynamic_rotate %104 by %c2_i32_32 dim 1 : vector<8x128xf32>, i32 -> vector<8x128xf32>
    %106 = vector.extract_strided_slice %7 {offsets = [0, 0], sizes = [1, 128], strides = [1, 1]} : vector<5x128xf32> to vector<1x128xf32>
    %107 = vector.broadcast %106 : vector<1x128xf32> to vector<8x128xf32>
    %108 = arith.mulf %105, %107 : vector<8x128xf32>
    %c126_i32_33 = arith.constant 126 : i32
    %109 = tpu.dynamic_rotate %104 by %c126_i32_33 dim 1 : vector<8x128xf32>, i32 -> vector<8x128xf32>
    %110 = vector.extract_strided_slice %7 {offsets = [2, 0], sizes = [1, 128], strides = [1, 1]} : vector<5x128xf32> to vector<1x128xf32>
    %111 = vector.broadcast %110 : vector<1x128xf32> to vector<8x128xf32>
    %112 = arith.mulf %109, %111 : vector<8x128xf32>
    %113 = tpu.concatenate %108, %104, %112 in 0 : vector<8x128xf32>, vector<8x128xf32>, vector<8x128xf32> -> vector<24x128xf32>
    %c3 = arith.constant 3 : index
    %c0_34 = arith.constant 0 : index
    %c0_35 = arith.constant 0 : index
    %114 = vector.load %arg3[%c3, %c0_34, %c0_35] : memref<7x8x24xf32, #tpu.memory_space<vmem>>, vector<1x8x24xf32>
    %115 = vector.shape_cast %114 : vector<1x8x24xf32> to vector<8x24xf32>
    %116 = arith.truncf %115 : vector<8x24xf32> to vector<8x24xbf16>
    %117 = arith.truncf %113 : vector<24x128xf32> to vector<24x128xbf16>
    %cst_36 = arith.constant dense<0.000000e+00> : vector<8x128xf32>
    %118 = tpu.matmul %116, %117, %cst_36 {dimension_numbers = #tpu.dot_dimension_numbers<[1], [0], [0], [1], [0, 0, 1, 1], [], []>} : vector<8x24xbf16>, vector<24x128xbf16>, vector<8x128xf32> -> vector<8x128xf32>
    %119 = vector.extract_strided_slice %2 {offsets = [88, 0], sizes = [8, 1], strides = [1, 1]} : vector<312x1xf32> to vector<8x1xf32>
    %120 = vector.broadcast %119 : vector<8x1xf32> to vector<8x128xf32>
    %121 = arith.addf %118, %120 : vector<8x128xf32>
    %cst_37 = arith.constant 0.000000e+00 : f32
    %122 = vector.broadcast %cst_37 : f32 to vector<8x128xf32>
    %123 = arith.maximumf %121, %122 : vector<8x128xf32>
    %124 = vector.extract_strided_slice %4 {offsets = [88, 0], sizes = [8, 1], strides = [1, 1]} : vector<312x1xf32> to vector<8x1xf32>
    %125 = vector.broadcast %124 : vector<8x1xf32> to vector<8x128xf32>
    %126 = arith.mulf %123, %125 : vector<8x128xf32>
    %127 = vector.extract_strided_slice %6 {offsets = [88, 0], sizes = [8, 1], strides = [1, 1]} : vector<312x1xf32> to vector<8x1xf32>
    %128 = vector.broadcast %127 : vector<8x1xf32> to vector<8x128xf32>
    %129 = arith.addf %126, %128 : vector<8x128xf32>
    %130 = vector.extract_strided_slice %22 {offsets = [32, 0], sizes = [8, 128], strides = [1, 1]} : vector<64x128xf32> to vector<8x128xf32>
    %131 = arith.addf %129, %130 : vector<8x128xf32>
    %c2_i32_38 = arith.constant 2 : i32
    %132 = tpu.dynamic_rotate %131 by %c2_i32_38 dim 1 : vector<8x128xf32>, i32 -> vector<8x128xf32>
    %133 = vector.extract_strided_slice %7 {offsets = [0, 0], sizes = [1, 128], strides = [1, 1]} : vector<5x128xf32> to vector<1x128xf32>
    %134 = vector.broadcast %133 : vector<1x128xf32> to vector<8x128xf32>
    %135 = arith.mulf %132, %134 : vector<8x128xf32>
    %c126_i32_39 = arith.constant 126 : i32
    %136 = tpu.dynamic_rotate %131 by %c126_i32_39 dim 1 : vector<8x128xf32>, i32 -> vector<8x128xf32>
    %137 = vector.extract_strided_slice %7 {offsets = [2, 0], sizes = [1, 128], strides = [1, 1]} : vector<5x128xf32> to vector<1x128xf32>
    %138 = vector.broadcast %137 : vector<1x128xf32> to vector<8x128xf32>
    %139 = arith.mulf %136, %138 : vector<8x128xf32>
    %140 = tpu.concatenate %135, %131, %139 in 0 : vector<8x128xf32>, vector<8x128xf32>, vector<8x128xf32> -> vector<24x128xf32>
    %c4 = arith.constant 4 : index
    %c0_40 = arith.constant 0 : index
    %c0_41 = arith.constant 0 : index
    %141 = vector.load %arg3[%c4, %c0_40, %c0_41] : memref<7x8x24xf32, #tpu.memory_space<vmem>>, vector<1x8x24xf32>
    %142 = vector.shape_cast %141 : vector<1x8x24xf32> to vector<8x24xf32>
    %143 = arith.truncf %142 : vector<8x24xf32> to vector<8x24xbf16>
    %144 = arith.truncf %140 : vector<24x128xf32> to vector<24x128xbf16>
    %cst_42 = arith.constant dense<0.000000e+00> : vector<8x128xf32>
    %145 = tpu.matmul %143, %144, %cst_42 {dimension_numbers = #tpu.dot_dimension_numbers<[1], [0], [0], [1], [0, 0, 1, 1], [], []>} : vector<8x24xbf16>, vector<24x128xbf16>, vector<8x128xf32> -> vector<8x128xf32>
    %146 = vector.extract_strided_slice %2 {offsets = [96, 0], sizes = [8, 1], strides = [1, 1]} : vector<312x1xf32> to vector<8x1xf32>
    %147 = vector.broadcast %146 : vector<8x1xf32> to vector<8x128xf32>
    %148 = arith.addf %145, %147 : vector<8x128xf32>
    %cst_43 = arith.constant 0.000000e+00 : f32
    %149 = vector.broadcast %cst_43 : f32 to vector<8x128xf32>
    %150 = arith.maximumf %148, %149 : vector<8x128xf32>
    %151 = vector.extract_strided_slice %4 {offsets = [96, 0], sizes = [8, 1], strides = [1, 1]} : vector<312x1xf32> to vector<8x1xf32>
    %152 = vector.broadcast %151 : vector<8x1xf32> to vector<8x128xf32>
    %153 = arith.mulf %150, %152 : vector<8x128xf32>
    %154 = vector.extract_strided_slice %6 {offsets = [96, 0], sizes = [8, 1], strides = [1, 1]} : vector<312x1xf32> to vector<8x1xf32>
    %155 = vector.broadcast %154 : vector<8x1xf32> to vector<8x128xf32>
    %156 = arith.addf %153, %155 : vector<8x128xf32>
    %157 = vector.extract_strided_slice %22 {offsets = [40, 0], sizes = [8, 128], strides = [1, 1]} : vector<64x128xf32> to vector<8x128xf32>
    %158 = arith.addf %156, %157 : vector<8x128xf32>
    %c2_i32_44 = arith.constant 2 : i32
    %159 = tpu.dynamic_rotate %158 by %c2_i32_44 dim 1 : vector<8x128xf32>, i32 -> vector<8x128xf32>
    %160 = vector.extract_strided_slice %7 {offsets = [0, 0], sizes = [1, 128], strides = [1, 1]} : vector<5x128xf32> to vector<1x128xf32>
    %161 = vector.broadcast %160 : vector<1x128xf32> to vector<8x128xf32>
    %162 = arith.mulf %159, %161 : vector<8x128xf32>
    %c126_i32_45 = arith.constant 126 : i32
    %163 = tpu.dynamic_rotate %158 by %c126_i32_45 dim 1 : vector<8x128xf32>, i32 -> vector<8x128xf32>
    %164 = vector.extract_strided_slice %7 {offsets = [2, 0], sizes = [1, 128], strides = [1, 1]} : vector<5x128xf32> to vector<1x128xf32>
    %165 = vector.broadcast %164 : vector<1x128xf32> to vector<8x128xf32>
    %166 = arith.mulf %163, %165 : vector<8x128xf32>
    %167 = tpu.concatenate %162, %158, %166 in 0 : vector<8x128xf32>, vector<8x128xf32>, vector<8x128xf32> -> vector<24x128xf32>
    %c5 = arith.constant 5 : index
    %c0_46 = arith.constant 0 : index
    %c0_47 = arith.constant 0 : index
    %168 = vector.load %arg3[%c5, %c0_46, %c0_47] : memref<7x8x24xf32, #tpu.memory_space<vmem>>, vector<1x8x24xf32>
    %169 = vector.shape_cast %168 : vector<1x8x24xf32> to vector<8x24xf32>
    %170 = arith.truncf %169 : vector<8x24xf32> to vector<8x24xbf16>
    %171 = arith.truncf %167 : vector<24x128xf32> to vector<24x128xbf16>
    %cst_48 = arith.constant dense<0.000000e+00> : vector<8x128xf32>
    %172 = tpu.matmul %170, %171, %cst_48 {dimension_numbers = #tpu.dot_dimension_numbers<[1], [0], [0], [1], [0, 0, 1, 1], [], []>} : vector<8x24xbf16>, vector<24x128xbf16>, vector<8x128xf32> -> vector<8x128xf32>
    %173 = vector.extract_strided_slice %2 {offsets = [104, 0], sizes = [8, 1], strides = [1, 1]} : vector<312x1xf32> to vector<8x1xf32>
    %174 = vector.broadcast %173 : vector<8x1xf32> to vector<8x128xf32>
    %175 = arith.addf %172, %174 : vector<8x128xf32>
    %cst_49 = arith.constant 0.000000e+00 : f32
    %176 = vector.broadcast %cst_49 : f32 to vector<8x128xf32>
    %177 = arith.maximumf %175, %176 : vector<8x128xf32>
    %178 = vector.extract_strided_slice %4 {offsets = [104, 0], sizes = [8, 1], strides = [1, 1]} : vector<312x1xf32> to vector<8x1xf32>
    %179 = vector.broadcast %178 : vector<8x1xf32> to vector<8x128xf32>
    %180 = arith.mulf %177, %179 : vector<8x128xf32>
    %181 = vector.extract_strided_slice %6 {offsets = [104, 0], sizes = [8, 1], strides = [1, 1]} : vector<312x1xf32> to vector<8x1xf32>
    %182 = vector.broadcast %181 : vector<8x1xf32> to vector<8x128xf32>
    %183 = arith.addf %180, %182 : vector<8x128xf32>
    %184 = vector.extract_strided_slice %22 {offsets = [48, 0], sizes = [8, 128], strides = [1, 1]} : vector<64x128xf32> to vector<8x128xf32>
    %185 = arith.addf %183, %184 : vector<8x128xf32>
    %c2_i32_50 = arith.constant 2 : i32
    %186 = tpu.dynamic_rotate %185 by %c2_i32_50 dim 1 : vector<8x128xf32>, i32 -> vector<8x128xf32>
    %187 = vector.extract_strided_slice %7 {offsets = [0, 0], sizes = [1, 128], strides = [1, 1]} : vector<5x128xf32> to vector<1x128xf32>
    %188 = vector.broadcast %187 : vector<1x128xf32> to vector<8x128xf32>
    %189 = arith.mulf %186, %188 : vector<8x128xf32>
    %c126_i32_51 = arith.constant 126 : i32
    %190 = tpu.dynamic_rotate %185 by %c126_i32_51 dim 1 : vector<8x128xf32>, i32 -> vector<8x128xf32>
    %191 = vector.extract_strided_slice %7 {offsets = [2, 0], sizes = [1, 128], strides = [1, 1]} : vector<5x128xf32> to vector<1x128xf32>
    %192 = vector.broadcast %191 : vector<1x128xf32> to vector<8x128xf32>
    %193 = arith.mulf %190, %192 : vector<8x128xf32>
    %194 = tpu.concatenate %189, %185, %193 in 0 : vector<8x128xf32>, vector<8x128xf32>, vector<8x128xf32> -> vector<24x128xf32>
    %c6 = arith.constant 6 : index
    %c0_52 = arith.constant 0 : index
    %c0_53 = arith.constant 0 : index
    %195 = vector.load %arg3[%c6, %c0_52, %c0_53] : memref<7x8x24xf32, #tpu.memory_space<vmem>>, vector<1x8x24xf32>
    %196 = vector.shape_cast %195 : vector<1x8x24xf32> to vector<8x24xf32>
    %197 = arith.truncf %196 : vector<8x24xf32> to vector<8x24xbf16>
    %198 = arith.truncf %194 : vector<24x128xf32> to vector<24x128xbf16>
    %cst_54 = arith.constant dense<0.000000e+00> : vector<8x128xf32>
    %199 = tpu.matmul %197, %198, %cst_54 {dimension_numbers = #tpu.dot_dimension_numbers<[1], [0], [0], [1], [0, 0, 1, 1], [], []>} : vector<8x24xbf16>, vector<24x128xbf16>, vector<8x128xf32> -> vector<8x128xf32>
    %200 = vector.extract_strided_slice %2 {offsets = [112, 0], sizes = [8, 1], strides = [1, 1]} : vector<312x1xf32> to vector<8x1xf32>
    %201 = vector.broadcast %200 : vector<8x1xf32> to vector<8x128xf32>
    %202 = arith.addf %199, %201 : vector<8x128xf32>
    %cst_55 = arith.constant 0.000000e+00 : f32
    %203 = vector.broadcast %cst_55 : f32 to vector<8x128xf32>
    %204 = arith.maximumf %202, %203 : vector<8x128xf32>
    %205 = vector.extract_strided_slice %4 {offsets = [112, 0], sizes = [8, 1], strides = [1, 1]} : vector<312x1xf32> to vector<8x1xf32>
    %206 = vector.broadcast %205 : vector<8x1xf32> to vector<8x128xf32>
    %207 = arith.mulf %204, %206 : vector<8x128xf32>
    %208 = vector.extract_strided_slice %6 {offsets = [112, 0], sizes = [8, 1], strides = [1, 1]} : vector<312x1xf32> to vector<8x1xf32>
    %209 = vector.broadcast %208 : vector<8x1xf32> to vector<8x128xf32>
    %210 = arith.addf %207, %209 : vector<8x128xf32>
    %211 = vector.extract_strided_slice %22 {offsets = [56, 0], sizes = [8, 128], strides = [1, 1]} : vector<64x128xf32> to vector<8x128xf32>
    %212 = tpu.concatenate %48, %75, %102, %129, %156, %183, %210, %211 in 0 : vector<8x128xf32>, vector<8x128xf32>, vector<8x128xf32>, vector<8x128xf32>, vector<8x128xf32>, vector<8x128xf32>, vector<8x128xf32>, vector<8x128xf32> -> vector<64x128xf32>
    %c0_56 = arith.constant 0 : index
    %c0_57 = arith.constant 0 : index
    %213 = vector.load %arg4[%c0_56, %c0_57] : memref<32x64xbf16, #tpu.memory_space<vmem>>, vector<32x64xbf16>
    %214 = arith.truncf %212 : vector<64x128xf32> to vector<64x128xbf16>
    %cst_58 = arith.constant dense<0.000000e+00> : vector<32x128xf32>
    %215 = tpu.matmul %213, %214, %cst_58 {dimension_numbers = #tpu.dot_dimension_numbers<[1], [0], [0], [1], [0, 0, 1, 1], [], []>} : vector<32x64xbf16>, vector<64x128xbf16>, vector<32x128xf32> -> vector<32x128xf32>
    %216 = vector.extract_strided_slice %2 {offsets = [120, 0], sizes = [32, 1], strides = [1, 1]} : vector<312x1xf32> to vector<32x1xf32>
    %217 = vector.broadcast %216 : vector<32x1xf32> to vector<32x128xf32>
    %218 = arith.addf %215, %217 : vector<32x128xf32>
    %cst_59 = arith.constant 0.000000e+00 : f32
    %219 = vector.broadcast %cst_59 : f32 to vector<32x128xf32>
    %220 = arith.maximumf %218, %219 : vector<32x128xf32>
    %221 = vector.extract_strided_slice %4 {offsets = [120, 0], sizes = [32, 1], strides = [1, 1]} : vector<312x1xf32> to vector<32x1xf32>
    %222 = vector.broadcast %221 : vector<32x1xf32> to vector<32x128xf32>
    %223 = arith.mulf %220, %222 : vector<32x128xf32>
    %224 = vector.extract_strided_slice %6 {offsets = [120, 0], sizes = [32, 1], strides = [1, 1]} : vector<312x1xf32> to vector<32x1xf32>
    %225 = vector.broadcast %224 : vector<32x1xf32> to vector<32x128xf32>
    %226 = arith.addf %223, %225 : vector<32x128xf32>
    %cst_60 = arith.constant dense<0.000000e+00> : vector<32x2xf32>
    %227 = tpu.matmul %226, %8, %cst_60 {dimension_numbers = #tpu.dot_dimension_numbers<[1], [1], [0], [0], [0, 0, 1, 0], [], []>} : vector<32x128xf32>, vector<2x128xf32>, vector<32x2xf32> -> vector<32x2xf32>
    %cst_61 = arith.constant 1.562500e-02 : f32
    %228 = vector.broadcast %cst_61 : f32 to vector<32x2xf32>
    %229 = arith.mulf %227, %228 : vector<32x2xf32>
    %c64 = arith.constant 64 : index
    %c0_62 = arith.constant 0 : index
    %230 = vector.load %arg2[%c64, %c0_62] : memref<192x32xbf16, #tpu.memory_space<vmem>>, vector<128x32xbf16>
    %231 = arith.truncf %229 : vector<32x2xf32> to vector<32x2xbf16>
    %cst_63 = arith.constant dense<0.000000e+00> : vector<128x2xf32>
    %232 = tpu.matmul %230, %231, %cst_63 {dimension_numbers = #tpu.dot_dimension_numbers<[1], [0], [0], [1], [0, 0, 1, 1], [], []>} : vector<128x32xbf16>, vector<32x2xbf16>, vector<128x2xf32> -> vector<128x2xf32>
    %233 = vector.extract_strided_slice %2 {offsets = [152, 0], sizes = [128, 1], strides = [1, 1]} : vector<312x1xf32> to vector<128x1xf32>
    %234 = vector.broadcast %233 : vector<128x1xf32> to vector<128x2xf32>
    %235 = arith.addf %232, %234 : vector<128x2xf32>
    %cst_64 = arith.constant 0.000000e+00 : f32
    %236 = vector.broadcast %cst_64 : f32 to vector<128x2xf32>
    %237 = arith.maximumf %235, %236 : vector<128x2xf32>
    %c0_65 = arith.constant 0 : index
    %c0_66 = arith.constant 0 : index
    %238 = vector.load %arg5[%c0_65, %c0_66] : memref<32x128xbf16, #tpu.memory_space<vmem>>, vector<32x128xbf16>
    %239 = arith.truncf %237 : vector<128x2xf32> to vector<128x2xbf16>
    %cst_67 = arith.constant dense<0.000000e+00> : vector<32x2xf32>
    %240 = tpu.matmul %238, %239, %cst_67 {dimension_numbers = #tpu.dot_dimension_numbers<[1], [0], [0], [1], [0, 0, 1, 1], [], []>} : vector<32x128xbf16>, vector<128x2xbf16>, vector<32x2xf32> -> vector<32x2xf32>
    %241 = vector.extract_strided_slice %2 {offsets = [280, 0], sizes = [32, 1], strides = [1, 1]} : vector<312x1xf32> to vector<32x1xf32>
    %242 = vector.broadcast %241 : vector<32x1xf32> to vector<32x2xf32>
    %243 = arith.addf %240, %242 : vector<32x2xf32>
    %cst_68 = arith.constant 0.000000e+00 : f32
    %244 = vector.broadcast %cst_68 : f32 to vector<32x2xf32>
    %245 = arith.subf %244, %243 : vector<32x2xf32>
    %246 = math.exp %245 : vector<32x2xf32>
    %cst_69 = arith.constant 1.000000e+00 : f32
    %247 = vector.broadcast %cst_69 : f32 to vector<32x2xf32>
    %248 = arith.addf %247, %246 : vector<32x2xf32>
    %cst_70 = arith.constant 1.000000e+00 : f32
    %249 = vector.broadcast %cst_70 : f32 to vector<32x2xf32>
    %250 = arith.divf %249, %248 : vector<32x2xf32>
    %cst_71 = arith.constant dense<0.000000e+00> : vector<32x128xf32>
    %251 = tpu.matmul %250, %8, %cst_71 {dimension_numbers = #tpu.dot_dimension_numbers<[1], [0], [0], [1], [0, 0, 1, 1], [], []>} : vector<32x2xf32>, vector<2x128xf32>, vector<32x128xf32> -> vector<32x128xf32>
    %252 = arith.mulf %226, %251 : vector<32x128xf32>
    %253 = arith.addf %252, %0 : vector<32x128xf32>
    %c0_72 = arith.constant 0 : index
    %c0_73 = arith.constant 0 : index
    %254 = vector.load %arg8[%c0_72, %c0_73] : memref<32x128xf32, #tpu.memory_space<vmem>>, vector<32x128xf32>
    tpu.vector_store %arg8[%c0_72, %c0_73], %253 {strides = array<i32>} : memref<32x128xf32, #tpu.memory_space<vmem>>, vector<32x128xf32>,
    return
  }
  func.func @transform_0(%arg0: i32) -> (i32, i32) {
    %c0_i32 = arith.constant 0 : i32
    %c0_i32_0 = arith.constant 0 : i32
    return %c0_i32, %arg0 : i32, i32
  }
  func.func @transform_1(%arg0: i32) -> (i32, i32) {
    %c0_i32 = arith.constant 0 : i32
    %c0_i32_0 = arith.constant 0 : i32
    %c0_i32_1 = arith.constant 0 : i32
    return %c0_i32, %c0_i32_0 : i32, i32
  }
  func.func @transform_2(%arg0: i32) -> (i32, i32, i32) {
    %c0_i32 = arith.constant 0 : i32
    %c0_i32_0 = arith.constant 0 : i32
    %c0_i32_1 = arith.constant 0 : i32
    %c0_i32_2 = arith.constant 0 : i32
    return %c0_i32, %c0_i32_0, %c0_i32_1 : i32, i32, i32
  }
  func.func @transform_3(%arg0: i32) -> (i32, i32) {
    %c0_i32 = arith.constant 0 : i32
    %c0_i32_0 = arith.constant 0 : i32
    %c0_i32_1 = arith.constant 0 : i32
    return %c0_i32, %c0_i32_0 : i32, i32
  }
  func.func @transform_4(%arg0: i32) -> (i32, i32) {
    %c0_i32 = arith.constant 0 : i32
    %c0_i32_0 = arith.constant 0 : i32
    %c0_i32_1 = arith.constant 0 : i32
    return %c0_i32, %c0_i32_0 : i32, i32
  }
  func.func @transform_5(%arg0: i32) -> (i32, i32, i32) {
    %c0_i32 = arith.constant 0 : i32
    %c0_i32_0 = arith.constant 0 : i32
    %c0_i32_1 = arith.constant 0 : i32
    %c0_i32_2 = arith.constant 0 : i32
    return %c0_i32, %c0_i32_0, %c0_i32_1 : i32, i32, i32
  }
  func.func @transform_6(%arg0: i32) -> (i32, i32) {
    %c0_i32 = arith.constant 0 : i32
    %c0_i32_0 = arith.constant 0 : i32
    %c0_i32_1 = arith.constant 0 : i32
    return %c0_i32, %c0_i32_0 : i32, i32
  }
  func.func @transform_7(%arg0: i32) -> (i32, i32) {
    %c0_i32 = arith.constant 0 : i32
    %c0_i32_0 = arith.constant 0 : i32
    return %c0_i32, %arg0 : i32, i32
  }
}

</mosaic_0001>

<bundles_post_ra>
// kernel: bottle2neck_forward.1
= control target key start
LH: loop header
LB: loop body
LE: loop exit
PB: predicated region body
PF: predicated region fallthrough
CT: control target
= control target key end

     0   :  { %s2484_s24 = smov 0   ;;  %s2486_s25 = smov 0   ;;  %s3014_s0 = inlined_call_operand.vmem [shape: f32[32,256], index: 0, kind: input, shape index: {}, may-alias: {0,7}]   ;;  %s3015_s1 = inlined_call_operand.vmem [shape: bf16[192,32], index: 1, kind: input, shape index: {}]   ;;  %s3016_s2 = inlined_call_operand.vmem [shape: f32[7,8,24], index: 2, kind: input, shape index: {}]   ;;  %s3017_s3 = inlined_call_operand.vmem [shape: bf16[32,64], index: 3, kind: input, shape index: {}]   ;;  %s3018_s4 = inlined_call_operand.vmem [shape: bf16[32,128], index: 4, kind: input, shape index: {}]   ;;  %s3019_s5 = inlined_call_operand.vmem [shape: f32[3,312,1], index: 5, kind: input, shape index: {}]   ;;  %s3020_s6 = inlined_call_operand.vmem [shape: f32[5,128], index: 6, kind: input, shape index: {}]   ;;  %s3021_s7 = inlined_call_operand.vmem [shape: f32[32,256], index: 7, kind: output, shape index: {}, may-alias: {0,7}]  }
   0x1   :  { %s2488_s26 = smov 0  }
   0x2 LB: > { %s2048_s27 = sadd.s32 4294967295, %s2437_s26   ;;  %s2501_s28 = sadd.s32 1, %s2437_s26   ;;  %s2437_s26 = sphi %s2488_s26, %s3025_s26   ;;  %s2433_s25 = sphi %s2486_s25, %s3024_s25   ;;  %s2429_s24 = sphi %s2484_s24, %s3023_s24  }
   0x3   : > { %s21_s29 = ssub.s32 %s2437_s26, %s2501_s28  ;;  %s24_s30 = sadd.s32 1, %s2433_s25 }
   0x4   : > { %p22_p0 = scmp.eq.s32.totalorder %s21_s29, 0  ;;  %p31_p1 = scmp.ne.s32.totalorder %s2433_s25, %s2429_s24 }
   0x5   : > { %p32_p2 = scmp.eq.s32.totalorder %s2437_s26, 0  ;;  %p187_p3 = scmp.eq.s32.totalorder %s2048_s27, 1 }
   0x6   : > { %s2512_s8 = scalar_select %p22_p0, %s2433_s25, %s24_s30  }
   0x7   : > { %p33_p4 = por %p32_p2, %p31_p1  ;;  %p2514_p5 = por %p187_p3, %p31_p1 }
   0x8   : > { %p2051_p6 = scmp.ge.s32.totalorder %s2437_s26, 2 }
   0xa   : > { %227 = sbr.rel (%p2051_p6) target bundleno = 24 (0x18), region = 40 }
  0x11   : > { %230 = sbr.rel (!%p33_p4) target bundleno = 24 (0x18), region = 44  ;;  %s232_s10 = sand.u32 (%p33_p4), 1, %s2433_s25  }
  0x12   : > { %s2053_s11 = sshll.u32 (%p33_p4), %s2437_s26, 3  ;;  %s2052_s12 = sshll.u32 (%p33_p4), %s232_s10, 5 }
  0x13   : > { %s236_s15 = scalar_lea.vmem (%p33_p4), %s3014_s0, %s2053_s11  ;;  %s234_s16 = scalar_lea.vmem (%p33_p4), [#allocation2], %s2052_s12 }
  0x14   : > { %v270_v0 = vld [vmem:[%s236_s15] sm:$0xff] (%p33_p4)  ;;  %v272_v1 = vld [vmem:[%s236_s15 + $0x10] sm:$0xff] (%p33_p4) }
  0x15   : > { %v274_v2 = vld [vmem:[%s236_s15 + $0x20] sm:$0xff] (%p33_p4)  ;;  %271 = vst [vmem:[%s234_s16] sm:$0xff] (%p33_p4), %v270_v0  ;;  %273 = vst [vmem:[%s234_s16 + $0x8] sm:$0xff] (%p33_p4), %v272_v1  ;;  %v276_v3 = vld [vmem:[%s236_s15 + $0x30] sm:$0xff] (%p33_p4) }
  0x16   : > { %275 = vst [vmem:[%s234_s16 + $0x10] sm:$0xff] (%p33_p4), %v274_v2  ;;  %277 = vst [vmem:[%s234_s16 + $0x18] sm:$0xff] (%p33_p4), %v276_v3 }
  0x18 PF: > { %p2054_p7 = scmp.ge.s32.totalorder %s2437_s26, 1  ;;  %p282_p8 = scmp.lt.s32.totalorder %s2437_s26, 3 }
  0x1a   : > { %p283_p9 = pnand %p2054_p7, %p282_p8 }
  0x1b   : > { %s289_s17 = sand.u32 (!%p283_p9), 1, %s2429_s24   ;;  %v2379_v4 = vld [vmem:[%s3015_s1] sm:$0xff] (!%p283_p9)   ;;  %vm474_vm0 = vcmask (!%p283_p9), 261120   ;;  %v2439_v9 = vmov (!%p283_p9), 0   ;;  %v2057_v10 = vld [vmem:[%s3019_s5 + $0x138] sm:$0xff] (!%p283_p9)  ;;  %v2076_v13 = vld [vmem:[%s3019_s5 + $0x270] sm:$0xff] (!%p283_p9)  ;;  %v658_v34 = vlaneseq (!%p283_p9) }
  0x1c   : > { %286 = sbr.rel (%p283_p9) target bundleno = 3875 (0xf23), region = 82  ;;  %s2530_s20 = sshll.u32 (!%p283_p9), %s289_s17, 5  ;;  %2214 = vmatprep.mubr.msk.bf16.mxu0 (!%p283_p9), %vm474_vm0, %v2379_v4  ;;  %v324_v5 = vld [vmem:[%s3019_s5] sm:$0xff] (!%p283_p9)  ;;  %2377 = vset.pattern.permute.xlu0 (!%p283_p9), %v2439_v9  ;;  %v2380_v15 = vld [vmem:[%s3015_s1 + $0x8] sm:$0xff] (!%p283_p9)   ;;  %v2440_v18 = vmov (!%p283_p9), 0.0   ;;  %vm2441_vm1 = vmmov (!%p283_p9), 0  }
  0x1d   : > { %s2537_s23 = scalar_lea.vmem (!%p283_p9), [#allocation2], %s2530_s20  ;;  %2378 = vset.pattern.permute.xlu1 (!%p283_p9), %v2439_v9  ;;  %416 = vperm.xlu0 (!%p283_p9), %2377, %v324_v5   ;;  %s2442_s13 = smov (!%p283_p9), 126   ;;  %v332_v28 = vld [vmem:[%s3019_s5 + $0x40] sm:$0xff] (!%p283_p9)  ;;  %v325_v29 = vld [vmem:[%s3019_s5 + $0x8] sm:$0xff] (!%p283_p9)  ;;  %v2065_v30 = vld [vmem:[%s3019_s5 + $0x178] sm:$0xff] (!%p283_p9)  ;;  %v659_v35 = vshrl.u32 (!%p283_p9), %v658_v34, 7 }
  0x1e   : > { %v320_v6 = vld [vmem:[%s2537_s23] sm:$0xff] (!%p283_p9)  ;;  %v321_v7 = vld [vmem:[%s2537_s23 + $0x8] sm:$0xff] (!%p283_p9)  ;;  %v322_v8 = vld [vmem:[%s2537_s23 + $0x10] sm:$0xff] (!%p283_p9)  ;;  %610 = vperm.xlu1 (!%p283_p9), %2378, %v2076_v13   ;;  %2222 = vmatprep.subr.bf16.mxu1 (!%p283_p9), %v2440_v18  ;;  %s2443_s14 = smov (!%p283_p9), 2   ;;  %vm683_vm2 = vcmask (!%p283_p9), 1043456   ;;  %vm679_vm3 = vcmask (!%p283_p9), 195584  }
  0x1f   : > { %v412_v11 = vpack.c.bf16 (!%p283_p9), %v321_v7, %v320_v6  ;;  %v323_v12 = vld [vmem:[%s2537_s23 + $0x18] sm:$0xff] (!%p283_p9)  ;;  %2226 = vmatprep.mubr.msk.bf16.mxu1 (!%p283_p9), %vm2441_vm1, %v2440_v18  ;;  %v2058_v31 = vld [vmem:[%s3019_s5 + $0x140] sm:$0xff] (!%p283_p9)  ;;  %v2084_v32 = vld [vmem:[%s3019_s5 + $0x2b0] sm:$0xff] (!%p283_p9)  ;;  %v667_v36 = vsub.s32 (!%p283_p9), 2, %v659_v35  ;;  %v660_v37 = vsub.s32 (!%p283_p9), 0, %v659_v35  ;;  %vm1234_vm4 = vcmask (!%p283_p9), 523264  }
  0x20   : > { %v413_v14 = vpack.c.bf16 (!%p283_p9), %v323_v12, %v322_v8  ;;  %v2077_v33 = vld [vmem:[%s3019_s5 + $0x278] sm:$0xff] (!%p283_p9)  ;;  %v2584_v38 = vld [vmem:[%s3020_s6] sm:$0x1f] (!%p283_p9)  ;;  %v333_v5 = vld [vmem:[%s3019_s5 + $0x48] sm:$0xff] (!%p283_p9)  ;;  %vm1839_vm5 = vcmask (!%p283_p9), 1041408   ;;  %vm1826_vm6 = vcmask (!%p283_p9), 15360  }
  0x21   : > { %2210 = vmatprep.subr.bf16.mxu0 (!%p283_p9), %v412_v11  ;;  %562 = vperm.xlu0 (!%p283_p9), %2377, %v2057_v10   ;;  %v2587_v39 = vrot.slane (!%p283_p9), %v2584_v38, %v667_v36  ;;  %v2590_v40 = vrot.slane (!%p283_p9), %v2584_v38, %v660_v37  ;;  %v670_v47 = vld [vmem:[%s3016_s2] sm:$0xff] (!%p283_p9)  ;;  %v326_v6 = vld [vmem:[%s3019_s5 + $0x10] sm:$0xff] (!%p283_p9)  ;;  %v2059_v8 = vld [vmem:[%s3019_s5 + $0x148] sm:$0xff] (!%p283_p9)  ;;  %s318_s30 = scalar_lea.vmem (!%p283_p9), [#allocation3], %s2530_s20 }
  0x22   : > { %2211 = vmatpush3.bf16.msra.mxu0 (!%p283_p9), %v412_v11  ;;  %v671_v49 = vpack.c.bf16 (!%p283_p9), %v670_v47, %v670_v47  ;;  %v2066_v7 = vld [vmem:[%s3019_s5 + $0x180] sm:$0xff] (!%p283_p9)  ;;  %v2085_v9 = vld [vmem:[%s3019_s5 + $0x2b8] sm:$0xff] (!%p283_p9) }
  0x23   : > { %2212 = vmatprep.subr.bf16.mxu0 %v413_v14  ;;  %v2078_v10 = vld [vmem:[%s3019_s5 + $0x280] sm:$0xff]  ;;  %v327_v47 = vld [vmem:[%s3019_s5 + $0x18] sm:$0xff]  ;;  %s2144_s10 = sshll.u32 (%p2514_p5), %s2048_s27, 3 }
  0x24   : > { %s1947_s15 = scalar_lea.vmem (%p2514_p5), %s3021_s7, %s2144_s10 }
  0x26   : > { %2213 = vmatpush3.bf16.msra.mxu0 %v413_v14 }
  0x27   : > { %2238 = vmatprep.subr.bf16.mxu0 %v2440_v18 }
  0x29   : > { %2215 = vmatmul.mubr.msk.bf16.vlgmr.msra.gmra.mrb[0].mxu0 %vm474_vm0, %v2380_v15 }
  0x9c   : > { %v417_v16 = vpop.permute.xlu0 %416 }
  0x9d   : > { %v611_v25 = vpop.permute.xlu1 %610 }
  0xa0   : > { %v563_v24 = vpop.permute.xlu0 %562 }
  0xfc   : > { %v2553_v17 = vpop.f32.mrb[0].mxu0 }
  0xfd   : > { %v521_v19 = vpop.f32.mrb[1].mxu0 }
  0xfe   : > { %v522_v20 = vadd.f32 %v521_v19, %v417_v16  ;;  %v2557_v21 = vpop.f32.mrb[2].mxu0  ;;  %v2104_v19 = vld [vmem:[%s3016_s2 + $0x8] sm:$0xff] }
  0xff   : > { %v524_v22 = vpop.f32.mrb[3].mxu0 }
 0x100   : > { %v552_v23 = vmax.f32 %v522_v20, 0.0 }
 0x102   : > { %v600_v26 = vmul.f32 %v563_v24, %v552_v23 }
 0x104   : > { %v648_v27 = vadd.f32 %v611_v25, %v600_v26  ;;  %v2381_v25 = vld [vmem:[%s3015_s1 + $0x10] sm:$0xff]   ;;  %v2382_v26 = vld [vmem:[%s3015_s1 + $0x18] sm:$0xff]  }
 0x105   : > { %2218 = vmatprep.mubr.msk.bf16.mxu0 %vm474_vm0, %v2381_v25  ;;  %v2068_v25 = vld [vmem:[%s3019_s5 + $0x190] sm:$0xff] }
 0x106   : > { %663 = vrot.lane.b32.xlu0 %v648_v27, %s2442_s13  ;;  %656 = vrot.lane.b32.xlu1 %v648_v27, %s2443_s14 }
 0x107   : > { %2219 = vmatmul.mubr.msk.bf16.gmra.mrb[4].mxu0 %vm474_vm0, %v2382_v26  ;;  %v2061_v26 = vld [vmem:[%s3019_s5 + $0x158] sm:$0xff] }
 0x108   : > { %2242 = vmatprep.mubr.msk.bf16.mxu0 %vm2441_vm1, %v2440_v18 }
 0x10a   : > { %676 = vperm.xlu0 %2377, %v332_v28   ;;  %421 = vperm.xlu1 %2378, %v325_v29  }
 0x10e   : > { %730 = vperm.xlu0 %2377, %v2065_v30   ;;  %567 = vperm.xlu1 %2378, %v2058_v31  }
 0x112   : > { %736 = vperm.xlu0 %2377, %v2084_v32   ;;  %615 = vperm.xlu1 %2378, %v2077_v33  }
 0x178   : > { %v664_v41 = vpop.permute.xlu0 %663  ;;  %v657_v42 = vpop.permute.xlu1 %656 }
 0x179   : > { %v669_v43 = vmul.f32 %v2587_v39, %v664_v41  ;;  %v662_v44 = vmul.f32 %v2590_v40, %v657_v42 }
 0x17b   : > { %v672_v45 = vpack.c.bf16 %v648_v27, %v662_v44  ;;  %v673_v46 = vpack.c.bf16 %v669_v43, %v669_v43 }
 0x17d   : > { %2223 = vmatpush3.bf16.msra.mxu1 %v672_v45  ;;  %v685_v48 = vsel %vm683_vm2, %v673_v46, 0  ;;  %v334_v46 = vld [vmem:[%s3019_s5 + $0x50] sm:$0xff] }
 0x17e   : > { %2224 = vmatprep.subr.bf16.mxu1 %v2440_v18 }
 0x181   : > { %2225 = vmatpush3.bf16.msra.mxu1 %v685_v48  ;;  %v2067_v48 = vld [vmem:[%s3019_s5 + $0x188] sm:$0xff] }
 0x182   : > { %2230 = vmatprep.subr.bf16.mxu1 %v2440_v18 }
 0x184   : > { %2227 = vmatmul.mubr.msk.bf16.vlgmr.msra.gmra.mrb[0].mxu1 %vm679_vm3, %v671_v49  ;;  %v2060_v49 = vld [vmem:[%s3019_s5 + $0x150] sm:$0xff] }
 0x185   : > { %2234 = vmatprep.mubr.msk.bf16.mxu1 %vm2441_vm1, %v2440_v18 }
 0x189   : > { %v422_v50 = vpop.permute.xlu1 %421  ;;  %v677_v51 = vpop.permute.xlu0 %676 }
 0x18a   : > { %v525_v52 = vadd.f32 %v524_v22, %v422_v50  ;;  %v749_v22 = vpack.c.bf16 %v2104_v19, %v2104_v19  ;;  %v2086_v50 = vld [vmem:[%s3019_s5 + $0x2c0] sm:$0xff] }
 0x18c   : > { %v553_v56 = vmax.f32 %v525_v52, 0.0 }
 0x18d   : > { %v568_v53 = vpop.permute.xlu1 %567  ;;  %v731_v54 = vpop.permute.xlu0 %730 }
 0x18e   : > { %v601_v63 = vmul.f32 %v568_v53, %v553_v56 }
 0x191   : > { %v616_v62 = vpop.permute.xlu1 %615  ;;  %v737_v1 = vpop.permute.xlu0 %736 }
 0x192   : > { %v649_v2 = vadd.f32 %v616_v62, %v601_v63 }
 0x257   : > { %v721_v55 = vpop.f32.mrb[0].mxu1 }
 0x258   : > { %v722_v57 = vadd.f32 %v721_v55, %v677_v51  ;;  %v2228_v58 = vpop.f32.mrb[1].mxu1  ;;  %v2079_v51 = vld [vmem:[%s3019_s5 + $0x288] sm:$0xff] }
 0x259   : > { %v724_v59 = vpop.f32.mrb[2].mxu1  ;;  %v2106_v58 = vld [vmem:[%s3016_s2 + $0x10] sm:$0xff] }
 0x25a   : > { %v727_v60 = vmax.f32 %v722_v57, 0.0  ;;  %v2229_v61 = vpop.f32.mrb[3].mxu1 }
 0x25b   : > { %v2682_v61 = vpop.f32.mrb[4].mxu0 }
 0x25c   : > { %v733_v0 = vmul.f32 %v731_v54, %v727_v60  ;;  %v825_v60 = vpack.c.bf16 %v2106_v58, %v2106_v58  ;;  %v537_v62 = vpop.f32.mrb[5].mxu0 }
 0x25d   : > { %v2684_v63 = vpop.f32.mrb[6].mxu0 }
 0x25e   : > { %v2603_v3 = vadd.f32 %v737_v1, %v733_v0  ;;  %v2686_v0 = vpop.f32.mrb[7].mxu0 }
 0x260   : > { %v740_v4 = vadd.f32 %v2603_v3, %v649_v2 }
 0x262   : > { %744 = vrot.lane.b32.xlu0 %v740_v4, %s2442_s13  ;;  %741 = vrot.lane.b32.xlu1 %v740_v4, %s2443_s14 }
 0x266   : > { %754 = vperm.xlu0 %2377, %v333_v5   ;;  %426 = vperm.xlu1 %2378, %v326_v6  }
 0x26a   : > { %806 = vperm.xlu0 %2377, %v2066_v7   ;;  %572 = vperm.xlu1 %2378, %v2059_v8  }
 0x26e   : > { %812 = vperm.xlu0 %2377, %v2085_v9   ;;  %620 = vperm.xlu1 %2378, %v2078_v10  }
 0x2d4   : > { %v745_v11 = vpop.permute.xlu0 %744  ;;  %v742_v12 = vpop.permute.xlu1 %741 }
 0x2d5   : > { %v746_v13 = vmul.f32 %v745_v11, %v2587_v39  ;;  %v743_v14 = vmul.f32 %v742_v12, %v2590_v40 }
 0x2d7   : > { %v750_v15 = vpack.c.bf16 %v740_v4, %v743_v14  ;;  %v751_v16 = vpack.c.bf16 %v746_v13, %v746_v13 }
 0x2d9   : > { %2231 = vmatpush3.bf16.msra.mxu1 %v750_v15  ;;  %v761_v20 = vsel %vm683_vm2, %v751_v16, 0 }
 0x2da   : > { %2232 = vmatprep.subr.bf16.mxu1 %v2440_v18 }
 0x2dd   : > { %2233 = vmatpush3.bf16.msra.mxu1 %v761_v20 }
 0x2de   : > { %2246 = vmatprep.subr.bf16.mxu1 %v2440_v18 }
 0x2e0   : > { %2235 = vmatmul.mubr.msk.bf16.vlgmr.msra.gmra.mrb[4].mxu1 %vm679_vm3, %v749_v22 }
 0x2e1   : > { %2250 = vmatprep.mubr.msk.bf16.mxu1 %vm2441_vm1, %v2440_v18 }
 0x2e5   : > { %v427_v23 = vpop.permute.xlu1 %426  ;;  %v755_v24 = vpop.permute.xlu0 %754 }
 0x2e6   : > { %v530_v27 = vadd.f32 %v2553_v17, %v427_v23 }
 0x2e8   : > { %v554_v31 = vmax.f32 %v530_v27, 0.0  ;;  %v2087_v27 = vld [vmem:[%s3019_s5 + $0x2c8] sm:$0xff] }
 0x2e9   : > { %v573_v28 = vpop.permute.xlu1 %572  ;;  %v807_v29 = vpop.permute.xlu0 %806 }
 0x2ea   : > { %v602_v41 = vmul.f32 %v573_v28, %v554_v31  ;;  %v2080_v28 = vld [vmem:[%s3019_s5 + $0x290] sm:$0xff] }
 0x2ed   : > { %v621_v37 = vpop.permute.xlu1 %620  ;;  %v813_v17 = vpop.permute.xlu0 %812 }
 0x2ee   : > { %v650_v43 = vadd.f32 %v621_v37, %v602_v41 }
 0x3b3   : > { %v797_v30 = vpop.f32.mrb[4].mxu1 }
 0x3b4   : > { %v798_v32 = vadd.f32 %v797_v30, %v755_v24  ;;  %v2236_v33 = vpop.f32.mrb[5].mxu1  ;;  %v328_v24 = vld [vmem:[%s3019_s5 + $0x20] sm:$0xff] }
 0x3b5   : > { %v800_v34 = vpop.f32.mrb[6].mxu1 }
 0x3b6   : > { %v803_v35 = vmax.f32 %v798_v32, 0.0  ;;  %v2237_v36 = vpop.f32.mrb[7].mxu1 }
 0x3b8   : > { %v809_v42 = vmul.f32 %v807_v29, %v803_v35  ;;  %v2108_v35 = vld [vmem:[%s3016_s2 + $0x18] sm:$0xff] }
 0x3b9   : > { %v901_v37 = vpack.c.bf16 %v2108_v35, %v2108_v35 }
 0x3ba   : > { %v2648_v44 = vadd.f32 %v813_v17, %v809_v42 }
 0x3bc   : > { %v816_v45 = vadd.f32 %v2648_v44, %v650_v43 }
 0x3be   : > { %820 = vrot.lane.b32.xlu0 %v816_v45, %s2442_s13  ;;  %817 = vrot.lane.b32.xlu1 %v816_v45, %s2443_s14 }
 0x3c2   : > { %830 = vperm.xlu0 %2377, %v334_v46   ;;  %431 = vperm.xlu1 %2378, %v327_v47  }
 0x3c6   : > { %882 = vperm.xlu0 %2377, %v2067_v48   ;;  %577 = vperm.xlu1 %2378, %v2060_v49  }
 0x3ca   : > { %888 = vperm.xlu0 %2377, %v2086_v50   ;;  %625 = vperm.xlu1 %2378, %v2079_v51  }
 0x430   : > { %v821_v52 = vpop.permute.xlu0 %820  ;;  %v818_v53 = vpop.permute.xlu1 %817 }
 0x431   : > { %v822_v54 = vmul.f32 %v821_v52, %v2587_v39  ;;  %v819_v55 = vmul.f32 %v818_v53, %v2590_v40 }
 0x433   : > { %v826_v56 = vpack.c.bf16 %v816_v45, %v819_v55  ;;  %v827_v57 = vpack.c.bf16 %v822_v54, %v822_v54 }
 0x435   : > { %2239 = vmatpush3.bf16.msra.mxu0 %v826_v56  ;;  %v837_v59 = vsel %vm683_vm2, %v827_v57, 0 }
 0x436   : > { %2240 = vmatprep.subr.bf16.mxu0 %v2440_v18 }
 0x439   : > { %2241 = vmatpush3.bf16.msra.mxu0 %v837_v59 }
 0x43a   : > { %2254 = vmatprep.subr.bf16.mxu0 %v2440_v18 }
 0x43c   : > { %2243 = vmatmul.mubr.msk.bf16.vlgmr.msra.gmra.mrb[8].mxu0 %vm679_vm3, %v825_v60  ;;  %v336_v60 = vld [vmem:[%s3019_s5 + $0x60] sm:$0xff] }
 0x43d   : > { %2258 = vmatprep.mubr.msk.bf16.mxu0 %vm2441_vm1, %v2440_v18 }
 0x441   : > { %v432_v1 = vpop.permute.xlu1 %431  ;;  %v831_v2 = vpop.permute.xlu0 %830 }
 0x442   : > { %v533_v4 = vadd.f32 %v2557_v21, %v432_v1  ;;  %v335_v21 = vld [vmem:[%s3019_s5 + $0x58] sm:$0xff] }
 0x443   : > { %v2069_v1 = vld [vmem:[%s3019_s5 + $0x198] sm:$0xff] }
 0x444   : > { %v555_v8 = vmax.f32 %v533_v4, 0.0  ;;  %v2088_v4 = vld [vmem:[%s3019_s5 + $0x2d0] sm:$0xff] }
 0x445   : > { %v578_v5 = vpop.permute.xlu1 %577  ;;  %v883_v6 = vpop.permute.xlu0 %882 }
 0x446   : > { %v603_v15 = vmul.f32 %v578_v5, %v555_v8  ;;  %v2081_v5 = vld [vmem:[%s3019_s5 + $0x298] sm:$0xff] }
 0x449   : > { %v626_v14 = vpop.permute.xlu1 %625  ;;  %v889_v19 = vpop.permute.xlu0 %888 }
 0x44a   : > { %v651_v20 = vadd.f32 %v626_v14, %v603_v15 }
 0x50f   : > { %v873_v7 = vpop.f32.mrb[8].mxu0 }
 0x510   : > { %v874_v9 = vadd.f32 %v873_v7, %v831_v2  ;;  %v2244_v10 = vpop.f32.mrb[9].mxu0  ;;  %v2062_v2 = vld [vmem:[%s3019_s5 + $0x160] sm:$0xff] }
 0x511   : > { %v876_v11 = vpop.f32.mrb[10].mxu0 }
 0x512   : > { %v879_v12 = vmax.f32 %v874_v9, 0.0  ;;  %v2245_v13 = vpop.f32.mrb[11].mxu0 }
 0x514   : > { %v885_v16 = vmul.f32 %v883_v6, %v879_v12  ;;  %v2110_v12 = vld [vmem:[%s3016_s2 + $0x20] sm:$0xff] }
 0x515   : > { %v977_v14 = vpack.c.bf16 %v2110_v12, %v2110_v12 }
 0x516   : > { %v2689_v22 = vadd.f32 %v889_v19, %v885_v16 }
 0x518   : > { %v892_v23 = vadd.f32 %v2689_v22, %v651_v20 }
 0x51a   : > { %896 = vrot.lane.b32.xlu0 %v892_v23, %s2442_s13  ;;  %893 = vrot.lane.b32.xlu1 %v892_v23, %s2443_s14 }
 0x51e   : > { %906 = vperm.xlu0 %2377, %v335_v21   ;;  %436 = vperm.xlu1 %2378, %v328_v24  }
 0x522   : > { %958 = vperm.xlu0 %2377, %v2068_v25   ;;  %582 = vperm.xlu1 %2378, %v2061_v26  }
 0x526   : > { %964 = vperm.xlu0 %2377, %v2087_v27   ;;  %630 = vperm.xlu1 %2378, %v2080_v28  }
 0x58c   : > { %v897_v29 = vpop.permute.xlu0 %896  ;;  %v894_v30 = vpop.permute.xlu1 %893 }
 0x58d   : > { %v898_v31 = vmul.f32 %v897_v29, %v2587_v39  ;;  %v895_v32 = vmul.f32 %v894_v30, %v2590_v40 }
 0x58f   : > { %v902_v33 = vpack.c.bf16 %v892_v23, %v895_v32  ;;  %v903_v34 = vpack.c.bf16 %v898_v31, %v898_v31 }
 0x591   : > { %2247 = vmatpush3.bf16.msra.mxu1 %v902_v33  ;;  %v913_v36 = vsel %vm683_vm2, %v903_v34, 0 }
 0x592   : > { %2248 = vmatprep.subr.bf16.mxu1 %v2440_v18 }
 0x595   : > { %2249 = vmatpush3.bf16.msra.mxu1 %v913_v36 }
 0x596   : > { %2262 = vmatprep.subr.bf16.mxu1 %v2440_v18 }
 0x598   : > { %2251 = vmatmul.mubr.msk.bf16.vlgmr.msra.gmra.mrb[8].mxu1 %vm679_vm3, %v901_v37  ;;  %v330_v37 = vld [vmem:[%s3019_s5 + $0x30] sm:$0xff] }
 0x599   : > { %2266 = vmatprep.mubr.msk.bf16.mxu1 %vm2441_vm1, %v2440_v18 }
 0x59d   : > { %v437_v41 = vpop.permute.xlu1 %436  ;;  %v907_v42 = vpop.permute.xlu0 %906 }
 0x59e   : > { %v538_v17 = vadd.f32 %v537_v62, %v437_v41  ;;  %v329_v62 = vld [vmem:[%s3019_s5 + $0x28] sm:$0xff]  ;;  %v2070_v41 = vld [vmem:[%s3019_s5 + $0x1a0] sm:$0xff] }
 0x5a0   : > { %v556_v47 = vmax.f32 %v538_v17, 0.0  ;;  %v2089_v17 = vld [vmem:[%s3019_s5 + $0x2d8] sm:$0xff] }
 0x5a1   : > { %v583_v43 = vpop.permute.xlu1 %582  ;;  %v959_v45 = vpop.permute.xlu0 %958 }
 0x5a2   : > { %v604_v54 = vmul.f32 %v583_v43, %v556_v47  ;;  %v2082_v43 = vld [vmem:[%s3019_s5 + $0x2a0] sm:$0xff] }
 0x5a5   : > { %v631_v53 = vpop.permute.xlu1 %630  ;;  %v965_v56 = vpop.permute.xlu0 %964 }
 0x5a6   : > { %v652_v57 = vadd.f32 %v631_v53, %v604_v54  ;;  %v1200_v53 = vpack.c.bf16 %v2648_v44, %v2603_v3 }
 0x66b   : > { %v949_v46 = vpop.f32.mrb[8].mxu1 }
 0x66c   : > { %v950_v48 = vadd.f32 %v949_v46, %v907_v42  ;;  %v2252_v49 = vpop.f32.mrb[9].mxu1  ;;  %v2063_v42 = vld [vmem:[%s3019_s5 + $0x168] sm:$0xff] }
 0x66d   : > { %v952_v50 = vpop.f32.mrb[10].mxu1 }
 0x66e   : > { %v955_v51 = vmax.f32 %v950_v48, 0.0  ;;  %v2253_v52 = vpop.f32.mrb[11].mxu1 }
 0x670   : > { %v961_v55 = vmul.f32 %v959_v45, %v955_v51  ;;  %v2112_v51 = vld [vmem:[%s3016_s2 + $0x28] sm:$0xff] }
 0x671   : > { %v1053_v54 = vpack.c.bf16 %v2112_v51, %v2112_v51  ;;  %v361_v51 = vld [vmem:[%s3019_s5 + $0x128] sm:$0xff] }
 0x672   : > { %v2723_v58 = vadd.f32 %v965_v56, %v961_v55 }
 0x674   : > { %v968_v59 = vadd.f32 %v2723_v58, %v652_v57  ;;  %v1201_v55 = vpack.c.bf16 %v2723_v58, %v2689_v22 }
 0x676   : > { %972 = vrot.lane.b32.xlu0 %v968_v59, %s2442_s13  ;;  %969 = vrot.lane.b32.xlu1 %v968_v59, %s2443_s14 }
 0x67a   : > { %982 = vperm.xlu0 %2377, %v336_v60   ;;  %441 = vperm.xlu1 %2378, %v329_v62  }
 0x67e   : > { %1034 = vperm.xlu0 %2377, %v2069_v1   ;;  %587 = vperm.xlu1 %2378, %v2062_v2  }
 0x682   : > { %1040 = vperm.xlu0 %2377, %v2088_v4   ;;  %635 = vperm.xlu1 %2378, %v2081_v5  }
 0x6e8   : > { %v973_v6 = vpop.permute.xlu0 %972  ;;  %v970_v7 = vpop.permute.xlu1 %969 }
 0x6e9   : > { %v974_v8 = vmul.f32 %v973_v6, %v2587_v39  ;;  %v971_v9 = vmul.f32 %v970_v7, %v2590_v40 }
 0x6eb   : > { %v978_v10 = vpack.c.bf16 %v968_v59, %v971_v9  ;;  %v979_v11 = vpack.c.bf16 %v974_v8, %v974_v8 }
 0x6ed   : > { %2255 = vmatpush3.bf16.msra.mxu0 %v978_v10  ;;  %v989_v13 = vsel %vm683_vm2, %v979_v11, 0 }
 0x6ee   : > { %2256 = vmatprep.subr.bf16.mxu0 %v2440_v18 }
 0x6f1   : > { %2257 = vmatpush3.bf16.msra.mxu0 %v989_v13  ;;  %v331_v13 = vld [vmem:[%s3019_s5 + $0x38] sm:$0xff] }
 0x6f2   : > { %2270 = vmatprep.subr.bf16.mxu0 %v2440_v18 }
 0x6f4   : > { %2259 = vmatmul.mubr.msk.bf16.vlgmr.msra.gmra.mrb[12].mxu0 %vm679_vm3, %v977_v14  ;;  %v2071_v14 = vld [vmem:[%s3019_s5 + $0x1a8] sm:$0xff] }
 0x6f5   : > { %2274 = vmatprep.mubr.msk.bf16.mxu0 %vm2441_vm1, %v2440_v18 }
 0x6f9   : > { %v442_v15 = vpop.permute.xlu1 %441  ;;  %v983_v16 = vpop.permute.xlu0 %982 }
 0x6fa   : > { %v541_v19 = vadd.f32 %v2686_v0, %v442_v15  ;;  %v337_v0 = vld [vmem:[%s3019_s5 + $0x68] sm:$0xff]  ;;  %v2064_v15 = vld [vmem:[%s3019_s5 + $0x170] sm:$0xff] }
 0x6fc   : > { %v557_v24 = vmax.f32 %v541_v19, 0.0  ;;  %v2083_v19 = vld [vmem:[%s3019_s5 + $0x2a8] sm:$0xff] }
 0x6fd   : > { %v588_v20 = vpop.permute.xlu1 %587  ;;  %v1035_v23 = vpop.permute.xlu0 %1034 }
 0x6fe   : > { %v605_v31 = vmul.f32 %v588_v20, %v557_v24  ;;  %v340_v20 = vld [vmem:[%s3019_s5 + $0x80] sm:$0xff]  ;;  %v341_v24 = vld [vmem:[%s3019_s5 + $0x88] sm:$0xff] }
 0x701   : > { %v636_v30 = vpop.permute.xlu1 %635  ;;  %v1041_v33 = vpop.permute.xlu0 %1040 }
 0x702   : > { %v653_v34 = vadd.f32 %v636_v30, %v605_v31  ;;  %v2074_v30 = vld [vmem:[%s3019_s5 + $0x1c0] sm:$0xff] }
 0x703   : > { %v2094_v31 = vld [vmem:[%s3019_s5 + $0x300] sm:$0xff] }
 0x7c7   : > { %v1025_v21 = vpop.f32.mrb[12].mxu0 }
 0x7c8   : > { %v1026_v25 = vadd.f32 %v1025_v21, %v983_v16  ;;  %v2260_v26 = vpop.f32.mrb[13].mxu0  ;;  %v2090_v16 = vld [vmem:[%s3019_s5 + $0x2e0] sm:$0xff]  ;;  %v2072_v21 = vld [vmem:[%s3019_s5 + $0x1b0] sm:$0xff] }
 0x7c9   : > { %v1028_v27 = vpop.f32.mrb[14].mxu0  ;;  %v342_v26 = vld [vmem:[%s3019_s5 + $0x90] sm:$0xff] }
 0x7ca   : > { %v1031_v28 = vmax.f32 %v1026_v25, 0.0  ;;  %v2261_v29 = vpop.f32.mrb[15].mxu0  ;;  %v2073_v25 = vld [vmem:[%s3019_s5 + $0x1b8] sm:$0xff]  ;;  %v2092_v27 = vld [vmem:[%s3019_s5 + $0x2f0] sm:$0xff] }
 0x7cb   : > { %v2075_v29 = vld [vmem:[%s3019_s5 + $0x1c8] sm:$0xff] }
 0x7cc   : > { %v1037_v32 = vmul.f32 %v1035_v23, %v1031_v28  ;;  %v339_v23 = vld [vmem:[%s3019_s5 + $0x78] sm:$0xff]  ;;  %v2091_v28 = vld [vmem:[%s3019_s5 + $0x2e8] sm:$0xff] }
 0x7ce   : > { %v1043_v35 = vadd.f32 %v1041_v33, %v1037_v32  ;;  %v2093_v32 = vld [vmem:[%s3019_s5 + $0x2f8] sm:$0xff]  ;;  %v344_v33 = vld [vmem:[%s3019_s5 + $0xa0] sm:$0xff] }
 0x7d0   : > { %v1044_v36 = vadd.f32 %v1043_v35, %v653_v34  ;;  %v343_v34 = vld [vmem:[%s3019_s5 + $0x98] sm:$0xff] }
 0x7d2   : > { %1048 = vrot.lane.b32.xlu0 %v1044_v36, %s2442_s13  ;;  %1045 = vrot.lane.b32.xlu1 %v1044_v36, %s2443_s14 }
 0x7d6   : > { %1058 = vperm.xlu0 %2377, %v337_v0   ;;  %446 = vperm.xlu1 %2378, %v330_v37   ;;  %v348_v0 = vld [vmem:[%s3019_s5 + $0xc0] sm:$0xff]  ;;  %v347_v37 = vld [vmem:[%s3019_s5 + $0xb8] sm:$0xff] }
 0x7da   : > { %1110 = vperm.xlu0 %2377, %v2070_v41   ;;  %592 = vperm.xlu1 %2378, %v2063_v42   ;;  %v350_v41 = vld [vmem:[%s3019_s5 + $0xd0] sm:$0xff]  ;;  %v349_v42 = vld [vmem:[%s3019_s5 + $0xc8] sm:$0xff] }
 0x7de   : > { %1116 = vperm.xlu0 %2377, %v2089_v17   ;;  %640 = vperm.xlu1 %2378, %v2082_v43   ;;  %v352_v17 = vld [vmem:[%s3019_s5 + $0xe0] sm:$0xff]  ;;  %v351_v43 = vld [vmem:[%s3019_s5 + $0xd8] sm:$0xff] }
 0x844   : > { %v1049_v45 = vpop.permute.xlu0 %1048  ;;  %v1046_v46 = vpop.permute.xlu1 %1045 }
 0x845   : > { %v1050_v47 = vmul.f32 %v1049_v45, %v2587_v39  ;;  %v1047_v48 = vmul.f32 %v1046_v46, %v2590_v40  ;;  %v354_v45 = vld [vmem:[%s3019_s5 + $0xf0] sm:$0xff]  ;;  %v353_v46 = vld [vmem:[%s3019_s5 + $0xe8] sm:$0xff] }
 0x847   : > { %v1054_v49 = vpack.c.bf16 %v1044_v36, %v1047_v48  ;;  %v1055_v50 = vpack.c.bf16 %v1050_v47, %v1050_v47  ;;  %v345_v36 = vld [vmem:[%s3019_s5 + $0xa8] sm:$0xff]  ;;  %v356_v47 = vld [vmem:[%s3019_s5 + $0x100] sm:$0xff]  ;;  %v355_v48 = vld [vmem:[%s3019_s5 + $0xf8] sm:$0xff] }
 0x849   : > { %2263 = vmatpush3.bf16.msra.mxu1 %v1054_v49  ;;  %v1065_v52 = vsel %vm683_vm2, %v1055_v50, 0  ;;  %v358_v49 = vld [vmem:[%s3019_s5 + $0x110] sm:$0xff]  ;;  %v357_v50 = vld [vmem:[%s3019_s5 + $0x108] sm:$0xff] }
 0x84a   : > { %2264 = vmatprep.subr.bf16.mxu1 %v2440_v18 }
 0x84d   : > { %2265 = vmatpush3.bf16.msra.mxu1 %v1065_v52  ;;  %v359_v52 = vld [vmem:[%s3019_s5 + $0x118] sm:$0xff] }
 0x84e   : > { %2278 = vmatprep.subr.bf16.mxu1 %v1200_v53 }
 0x850   : > { %2267 = vmatmul.mubr.msk.bf16.vlgmr.msra.gmra.mrb[12].mxu1 %vm679_vm3, %v1053_v54  ;;  %v360_v54 = vld [vmem:[%s3019_s5 + $0x120] sm:$0xff] }
 0x851   : > { %2279 = vmatpush3.bf16.msra.mxu1 %v1200_v53  ;;  %v362_v53 = vld [vmem:[%s3019_s5 + $0x130] sm:$0xff] }
 0x852   : > { %2280 = vmatprep.subr.bf16.mxu1 %v1201_v55 }
 0x855   : > { %2281 = vmatpush3.bf16.msra.mxu1 %v1201_v55  ;;  %v447_v56 = vpop.permute.xlu1 %446  ;;  %v1059_v57 = vpop.permute.xlu0 %1058 }
 0x856   : > { %v546_v59 = vadd.f32 %v2682_v61, %v447_v56  ;;  %v338_v61 = vld [vmem:[%s3019_s5 + $0x70] sm:$0xff] }
 0x858   : > { %v558_v2 = vmax.f32 %v546_v59, 0.0 }
 0x859   : > { %v593_v60 = vpop.permute.xlu1 %592  ;;  %v1111_v62 = vpop.permute.xlu0 %1110 }
 0x85a   : > { %v606_v8 = vmul.f32 %v593_v60, %v558_v2 }
 0x85d   : > { %v641_v7 = vpop.permute.xlu1 %640  ;;  %v1117_v22 = vpop.permute.xlu0 %1116 }
 0x85e   : > { %v654_v58 = vadd.f32 %v641_v7, %v606_v8 }
 0x923   : > { %v1101_v1 = vpop.f32.mrb[12].mxu1 }
 0x924   : > { %v1102_v3 = vadd.f32 %v1101_v1, %v1059_v57  ;;  %v2268_v44 = vpop.f32.mrb[13].mxu1  ;;  %v2114_v1 = vld [vmem:[%s3016_s2 + $0x30] sm:$0xff] }
 0x925   : > { %v1104_v4 = vpop.f32.mrb[14].mxu1 }
 0x926   : > { %v1107_v5 = vmax.f32 %v1102_v3, 0.0  ;;  %v2269_v6 = vpop.f32.mrb[15].mxu1  ;;  %v1129_v3 = vpack.c.bf16 %v2114_v1, %v2114_v1 }
 0x928   : > { %v1113_v9 = vmul.f32 %v1111_v62, %v1107_v5 }
 0x92a   : > { %v1119_v10 = vadd.f32 %v1117_v22, %v1113_v9 }
 0x92c   : > { %v1202_v11 = vpack.c.bf16 %v1119_v10, %v1043_v35  ;;  %v2791_v12 = vadd.f32 %v1119_v10, %v654_v58  ;;  %v346_v35 = vld [vmem:[%s3019_s5 + $0xb0] sm:$0xff] }
 0x92e   : > { %2282 = vmatprep.subr.bf16.mxu1 %v1202_v11  ;;  %1124 = vrot.lane.b32.xlu0 %v2791_v12, %s2442_s13 }
 0x92f   : > { %1121 = vrot.lane.b32.xlu1 %v2791_v12, %s2443_s14  ;;  %2283 = vmatpush3.bf16.msra.mxu1 %v1202_v11 }
 0x932   : > { %1134 = vperm.xlu0 %2377, %v338_v61  }
 0x933   : > { %451 = vperm.xlu1 %2378, %v331_v13  }
 0x936   : > { %1186 = vperm.xlu0 %2377, %v2071_v14  }
 0x937   : > { %597 = vperm.xlu1 %2378, %v2064_v15  }
 0x93a   : > { %1192 = vperm.xlu0 %2377, %v2090_v16  }
 0x93b   : > { %645 = vperm.xlu1 %2378, %v2083_v19   ;;  %v2930_v19 = vrot.slane %v2584_v38, 3 }
 0x93e   : > { %1211 = vperm.xlu0 %2377, %v340_v20  }
 0x93f   : > { %1206 = vperm.xlu1 %2378, %v339_v23  }
 0x942   : > { %1296 = vperm.xlu0 %2377, %v2072_v21  }
 0x943   : > { %1216 = vperm.xlu1 %2378, %v341_v24  }
 0x946   : > { %1301 = vperm.xlu0 %2377, %v2073_v25  }
 0x947   : > { %1221 = vperm.xlu1 %2378, %v342_v26  }
 0x94a   : > { %1325 = vperm.xlu0 %2377, %v2092_v27  }
 0x94b   : > { %1320 = vperm.xlu1 %2378, %v2091_v28  }
 0x94e   : > { %1311 = vperm.xlu0 %2377, %v2075_v29  }
 0x94f   : > { %1306 = vperm.xlu1 %2378, %v2074_v30  }
 0x952   : > { %1335 = vperm.xlu0 %2377, %v2094_v31  }
 0x953   : > { %1330 = vperm.xlu1 %2378, %v2093_v32  }
 0x956   : > { %1459 = vperm.xlu0 %2377, %v344_v33  }
 0x957   : > { %1454 = vperm.xlu1 %2378, %v343_v34  }
 0x95a   : > { %1469 = vperm.xlu0 %2377, %v346_v35  }
 0x95b   : > { %1464 = vperm.xlu1 %2378, %v345_v36  }
 0x95e   : > { %1479 = vperm.xlu0 %2377, %v348_v0  }
 0x95f   : > { %1474 = vperm.xlu1 %2378, %v347_v37  }
 0x962   : > { %1489 = vperm.xlu0 %2377, %v350_v41  }
 0x963   : > { %1484 = vperm.xlu1 %2378, %v349_v42  }
 0x966   : > { %1499 = vperm.xlu0 %2377, %v352_v17  }
 0x967   : > { %1494 = vperm.xlu1 %2378, %v351_v43  }
 0x96a   : > { %1509 = vperm.xlu0 %2377, %v354_v45  }
 0x96b   : > { %1504 = vperm.xlu1 %2378, %v353_v46  }
 0x96e   : > { %1519 = vperm.xlu0 %2377, %v356_v47  }
 0x96f   : > { %1514 = vperm.xlu1 %2378, %v355_v48  }
 0x972   : > { %1529 = vperm.xlu0 %2377, %v358_v49  }
 0x973   : > { %1524 = vperm.xlu1 %2378, %v357_v50  }
 0x976   : > { %1733 = vperm.xlu0 %2377, %v361_v51  }
 0x977   : > { %1723 = vperm.xlu1 %2378, %v359_v52  }
 0x97a   : > { %1738 = vperm.xlu0 %2377, %v362_v53  }
 0x97b   : > { %1728 = vperm.xlu1 %2378, %v360_v54   ;;  %v2385_v54 = vld [vmem:[%s3015_s1 + $0x20] sm:$0xff]  }
 0x9a0   : > { %v1125_v55 = vpop.permute.xlu0 %1124 }
 0x9a1   : > { %v1126_v56 = vmul.f32 %v1125_v55, %v2587_v39  ;;  %v1122_v57 = vpop.permute.xlu1 %1121  ;;  %v2383_v39 = vld [vmem:[%s3017_s3] sm:$0xff]  }
 0x9a2   : > { %v1123_v59 = vmul.f32 %v1122_v57, %v2590_v40  ;;  %2286 = vmatprep.mubr.msk.bf16.mxu1 %vm1234_vm4, %v2383_v39 }
 0x9a3   : > { %v1131_v62 = vpack.c.bf16 %v1126_v56, %v1126_v56 }
 0x9a4   : > { %v1130_v60 = vpack.c.bf16 %v2791_v12, %v1123_v59 }
 0x9a5   : > { %v1141_v2 = vsel %vm683_vm2, %v1131_v62, 0 }
 0x9a6   : > { %2271 = vmatpush3.bf16.msra.mxu0 %v1130_v60 }
 0x9a7   : > { %2272 = vmatprep.subr.bf16.mxu0 %v2440_v18 }
 0x9aa   : > { %2273 = vmatpush3.bf16.msra.mxu0 %v1141_v2 }
 0x9ab   : > { %2290 = vmatprep.subr.mxu0 %v2930_v19 }
 0x9ad   : > { %2275 = vmatmul.mubr.msk.bf16.vlgmr.msra.gmra.mrb[16].mxu0 %vm679_vm3, %v1129_v3 }
 0x9b1   : > { %v1135_v44 = vpop.permute.xlu0 %1134 }
 0x9b2   : > { %v452_v40 = vpop.permute.xlu1 %451 }
 0x9b3   : > { %v549_v4 = vadd.f32 %v2684_v63, %v452_v40  ;;  %v2384_v63 = vld [vmem:[%s3017_s3 + $0x8] sm:$0xff]   ;;  %2291 = vmatpush3.xpose.msra.mxu0 %v2930_v19 }
 0x9b4   : > { %v2386_v40 = vld [vmem:[%s3015_s1 + $0x28] sm:$0xff]  }
 0x9b5   : > { %v1187_v6 = vpop.permute.xlu0 %1186  ;;  %v559_v7 = vmax.f32 %v549_v4, 0.0  ;;  %v2388_v4 = vld [vmem:[%s3015_s1 + $0x38] sm:$0xff]  }
 0x9b6   : > { %v598_v5 = vpop.permute.xlu1 %597 }
 0x9b7   : > { %v607_v12 = vmul.f32 %v598_v5, %v559_v7  ;;  %v2389_v5 = vld [vmem:[%s3015_s1 + $0x40] sm:$0xff]   ;;  %v2392_v7 = vld [vmem:[%s3015_s1 + $0x58] sm:$0xff]  }
 0x9b9   : > { %v1193_v13 = vpop.permute.xlu0 %1192 }
 0x9ba   : > { %v646_v11 = vpop.permute.xlu1 %645 }
 0x9bb   : > { %v655_v14 = vadd.f32 %v646_v11, %v607_v12 }
 0x9bd   : > { %v1212_v23 = vpop.permute.xlu0 %1211 }
 0x9be   : > { %v1207_v20 = vpop.permute.xlu1 %1206 }
 0x9c1   : > { %v1297_v24 = vpop.permute.xlu0 %1296 }
 0x9c2   : > { %v1217_v21 = vpop.permute.xlu1 %1216 }
 0x9c5   : > { %v1302_v26 = vpop.permute.xlu0 %1301 }
 0x9c6   : > { %v1222_v25 = vpop.permute.xlu1 %1221 }
 0x9c9   : > { %v1326_v29 = vpop.permute.xlu0 %1325 }
 0x9ca   : > { %v1321_v27 = vpop.permute.xlu1 %1320 }
 0x9cd   : > { %v1312_v43 = vpop.permute.xlu0 %1311 }
 0x9ce   : > { %v1307_v36 = vpop.permute.xlu1 %1306 }
 0x9d1   : > { %v1336_v52 = vpop.permute.xlu0 %1335 }
 0x9d2   : > { %v1331_v48 = vpop.permute.xlu1 %1330 }
 0xa80   : > { %v1177_v18 = vpop.f32.mrb[16].mxu0 }
 0xa81   : > { %v1178_v8 = vadd.f32 %v1177_v18, %v1135_v44  ;;  %v2276_v9 = vpop.f32.mrb[17].mxu0  ;;  %v2387_v44 = vld [vmem:[%s3015_s1 + $0x30] sm:$0xff]  }
 0xa82   : > { %v1180_v22 = vpop.f32.mrb[18].mxu0  ;;  %v2391_v18 = vld [vmem:[%s3015_s1 + $0x50] sm:$0xff]   ;;  %v1455_v9 = vpop.permute.xlu1 %1454 }
 0xa83   : > { %v1183_v58 = vmax.f32 %v1178_v8, 0.0  ;;  %v2277_v10 = vpop.f32.mrb[19].mxu0  ;;  %v2393_v8 = vld [vmem:[%s3018_s4] sm:$0xff]   ;;  %v1460_v22 = vpop.permute.xlu0 %1459 }
 0xa85   : > { %v1189_v61 = vmul.f32 %v1187_v6, %v1183_v58  ;;  %v2390_v6 = vld [vmem:[%s3015_s1 + $0x48] sm:$0xff]  }
 0xa86   : > { %v1465_v58 = vpop.permute.xlu1 %1464 }
 0xa87   : > { %v1195_v15 = vadd.f32 %v1193_v13, %v1189_v61  ;;  %v1470_v10 = vpop.permute.xlu0 %1469 }
 0xa89   : > { %v1203_v16 = vpack.c.bf16 %v655_v14, %v1195_v15 }
 0xa8a   : > { %v1475_v11 = vpop.permute.xlu1 %1474 }
 0xa8b   : > { %2284 = vmatprep.subr.bf16.mxu1 %v1203_v16  ;;  %v1480_v12 = vpop.permute.xlu0 %1479 }
 0xa8c   : > { %2285 = vmatpush3.bf16.msra.mxu1 %v1203_v16 }
 0xa8e   : > { %v1485_v61 = vpop.permute.xlu1 %1484 }
 0xa8f   : > { %2287 = vmatmul.mubr.msk.bf16.vlgmr.msra.gmra.mrb[16].mxu1 %vm1234_vm4, %v2384_v63  ;;  %v1490_v16 = vpop.permute.xlu0 %1489 }
 0xa90   : > { %2334 = vmatprep.mubr.bf16.mxu1 %v2393_v8 }
 0xb62   : > { %v2288_v28 = vpop.f32.mrb[16].mxu1 }
 0xb63   : > { %v1284_v30 = vadd.f32 %v2288_v28, %v1217_v21  ;;  %v1275_v31 = vpop.f32.mrb[17].mxu1 }
 0xb64   : > { %v1276_v32 = vadd.f32 %v1275_v31, %v1207_v20  ;;  %v2289_v33 = vpop.f32.mrb[18].mxu1  ;;  %v1500_v31 = vpop.permute.xlu0 %1499 }
 0xb65   : > { %v1292_v34 = vmax.f32 %v1284_v30, 0.0  ;;  %v1287_v38 = vadd.f32 %v2289_v33, %v1222_v25  ;;  %v1278_v35 = vpop.f32.mrb[19].mxu1 }
 0xb66   : > { %v1290_v0 = vmax.f32 %v1276_v32, 0.0  ;;  %v1279_v37 = vadd.f32 %v1278_v35, %v1212_v23 }
 0xb67   : > { %v1293_v42 = vmax.f32 %v1287_v38, 0.0  ;;  %v1316_v45 = vmul.f32 %v1307_v36, %v1292_v34 }
 0xb68   : > { %v1314_v41 = vmul.f32 %v1297_v24, %v1290_v0  ;;  %v1291_v17 = vmax.f32 %v1279_v37, 0.0 }
 0xb69   : > { %v1317_v49 = vmul.f32 %v1312_v43, %v1293_v42  ;;  %v2939_v51 = vadd.f32 %v1331_v48, %v1316_v45  ;;  %v1510_v45 = vpop.permute.xlu0 %1509 }
 0xb6a   : > { %v1315_v46 = vmul.f32 %v1302_v26, %v1291_v17  ;;  %v2934_v47 = vadd.f32 %v1321_v27, %v1314_v41  ;;  %v1495_v27 = vpop.permute.xlu1 %1494 }
 0xb6b   : > { %v2943_v53 = vadd.f32 %v1336_v52, %v1317_v49 }
 0xb6c   : > { %v2936_v50 = vadd.f32 %v1326_v29, %v1315_v46  ;;  %2292 = vmatprep.mubr.f32.mxu0 %v2934_v47 }
 0xb6e   : > { %2293 = vmatmul.mubr.f32.vlgmr.msra.gmra.mrb[20].mxu0 %v2936_v50  ;;  %v1505_v41 = vpop.permute.xlu1 %1504 }
 0xb6f   : > { %2295 = vmatprep.mubr.f32.mxu0 %v2939_v51 }
 0xb72   : > { %2296 = vmatmul.mubr.f32.gmra.mrb[22].mxu0 %v2943_v53 }
 0xb73   : > { %2302 = vmatprep.mubr.msk.bf16.mxu0 %vm474_vm0, %v2385_v54 }
 0xc41   : > { %v2294_v55 = vpop.f32.mrb[20].mxu0 }
 0xc42   : > { %v1431_v56 = vmul.f32 0.015625, %v2294_v55  ;;  %v1411_v57 = vpop.f32.mrb[21].mxu0 }
 0xc43   : > { %v1430_v59 = vmul.f32 0.015625, %v1411_v57  ;;  %v1515_v57 = vpop.permute.xlu1 %1514 }
 0xc45   : > { %v1450_v60 = vpack.c.bf16 %v1431_v56, %v1430_v59  ;;  %v2297_v62 = vpop.f32.mrb[22].mxu0 }
 0xc46   : > { %v1433_v1 = vmul.f32 0.015625, %v2297_v62  ;;  %v1421_v2 = vpop.f32.mrb[23].mxu0 }
 0xc47   : > { %v1432_v3 = vmul.f32 0.015625, %v1421_v2  ;;  %2298 = vmatprep.subr.bf16.mxu0 %v1450_v60  ;;  %v1520_v2 = vpop.permute.xlu0 %1519 }
 0xc48   : > { %2299 = vmatpush3.bf16.msra.mxu0 %v1450_v60 }
 0xc49   : > { %v1451_v39 = vpack.c.bf16 %v1433_v1, %v1432_v3 }
 0xc4b   : > { %2300 = vmatprep.subr.bf16.mxu0 %v1451_v39 }
 0xc4c   : > { %2301 = vmatpush3.bf16.msra.mxu0 %v1451_v39 }
 0xc4d   : > { %2338 = vmatprep.subr.msk.mxu0 %vm1839_vm5, %v2930_v19 }
 0xc4f   : > { %2303 = vmatmul.mubr.msk.bf16.vlgmr.msra.gmra.mrb[24].mxu0 %vm474_vm0, %v2386_v40 }
 0xc50   : > { %2306 = vmatprep.mubr.msk.bf16.mxu0 %vm474_vm0, %v2387_v44  ;;  %2339 = vmatpush3.msk.msra.mxu0 %vm1839_vm5, %v2930_v19 }
 0xc57   : > { %2307 = vmatmul.mubr.msk.bf16.gmra.mrb[28].mxu0 %vm474_vm0, %v2388_v4 }
 0xc58   : > { %2310 = vmatprep.mubr.msk.bf16.mxu0 %vm474_vm0, %v2389_v5 }
 0xc5f   : > { %2311 = vmatmul.mubr.msk.bf16.gmra.mrb[32].mxu0 %vm474_vm0, %v2390_v6  ;;  %v1525_v6 = vpop.permute.xlu1 %1524 }
 0xc60   : > { %2314 = vmatprep.mubr.msk.bf16.mxu0 %vm474_vm0, %v2391_v18 }
 0xc67   : > { %2315 = vmatmul.mubr.msk.bf16.gmra.mrb[36].mxu0 %vm474_vm0, %v2392_v7 }
 0xd22   : > { %v2304_v13 = vpop.f32.mrb[24].mxu0 }
 0xd23   : > { %v1639_v14 = vadd.f32 %v2304_v13, %v1465_v58  ;;  %v1630_v15 = vpop.f32.mrb[25].mxu0 }
 0xd24   : > { %v1631_v63 = vadd.f32 %v1630_v15, %v1455_v9  ;;  %v2305_v20 = vpop.f32.mrb[26].mxu0 }
 0xd25   : > { %v1642_v23 = vadd.f32 %v2305_v20, %v1470_v10  ;;  %v1633_v21 = vpop.f32.mrb[27].mxu0  ;;  %v1695_v25 = vmax.f32 %v1639_v14, 0.0 }
 0xd26   : > { %v1634_v24 = vadd.f32 %v1633_v21, %v1460_v22  ;;  %v1693_v28 = vmax.f32 %v1631_v63, 0.0  ;;  %v1530_v22 = vpop.permute.xlu0 %1529 }
 0xd27   : > { %v1696_v26 = vmax.f32 %v1642_v23, 0.0  ;;  %v2394_v23 = vld [vmem:[%s3018_s4 + $0x8] sm:$0xff]  }
 0xd28   : > { %v1694_v29 = vmax.f32 %v1634_v24, 0.0  ;;  %v1724_v24 = vpop.permute.xlu1 %1723 }
 0xd29   : > { %v1714_v30 = vpack.c.bf16 %v1696_v26, %v1695_v25 }
 0xd2a   : > { %v1713_v32 = vpack.c.bf16 %v1694_v29, %v1693_v28  ;;  %v2308_v33 = vpop.f32.mrb[28].mxu0  ;;  %v1734_v21 = vpop.permute.xlu0 %1733 }
 0xd2b   : > { %v1655_v34 = vadd.f32 %v2308_v33, %v1485_v61  ;;  %v1646_v38 = vpop.f32.mrb[29].mxu0 }
 0xd2c   : > { %v1647_v35 = vadd.f32 %v1646_v38, %v1475_v11  ;;  %v2309_v36 = vpop.f32.mrb[30].mxu0  ;;  %2318 = vmatprep.subr.bf16.mxu1 %v1713_v32 }
 0xd2d   : > { %v1658_v0 = vadd.f32 %v2309_v36, %v1490_v16  ;;  %v1649_v37 = vpop.f32.mrb[31].mxu0  ;;  %2319 = vmatpush3.bf16.msra.mxu1 %v1713_v32  ;;  %v1699_v17 = vmax.f32 %v1655_v34, 0.0 }
 0xd2e   : > { %v1650_v42 = vadd.f32 %v1649_v37, %v1480_v12  ;;  %2320 = vmatprep.subr.bf16.mxu1 %v1714_v30  ;;  %v1697_v46 = vmax.f32 %v1647_v35, 0.0  ;;  %v1739_v28 = vpop.permute.xlu0 %1738 }
 0xd2f   : > { %v1700_v43 = vmax.f32 %v1658_v0, 0.0 }
 0xd30   : > { %v1698_v48 = vmax.f32 %v1650_v42, 0.0 }
 0xd31   : > { %v1716_v49 = vpack.c.bf16 %v1700_v43, %v1699_v17  ;;  %2321 = vmatpush3.bf16.msra.mxu1 %v1714_v30 }
 0xd32   : > { %v1715_v52 = vpack.c.bf16 %v1698_v48, %v1697_v46  ;;  %v2312_v54 = vpop.f32.mrb[32].mxu0 }
 0xd33   : > { %v1671_v55 = vadd.f32 %v2312_v54, %v1505_v41  ;;  %v1662_v56 = vpop.f32.mrb[33].mxu0 }
 0xd34   : > { %v1663_v59 = vadd.f32 %v1662_v56, %v1495_v27  ;;  %v2313_v60 = vpop.f32.mrb[34].mxu0  ;;  %2322 = vmatprep.subr.bf16.mxu1 %v1715_v52 }
 0xd35   : > { %v1674_v62 = vadd.f32 %v2313_v60, %v1510_v45  ;;  %v1665_v1 = vpop.f32.mrb[35].mxu0  ;;  %2323 = vmatpush3.bf16.msra.mxu1 %v1715_v52  ;;  %v1703_v39 = vmax.f32 %v1671_v55, 0.0 }
 0xd36   : > { %v1666_v3 = vadd.f32 %v1665_v1, %v1500_v31  ;;  %2324 = vmatprep.subr.bf16.mxu1 %v1716_v49  ;;  %v1701_v44 = vmax.f32 %v1663_v59, 0.0  ;;  %v1729_v31 = vpop.permute.xlu1 %1728 }
 0xd37   : > { %v1704_v40 = vmax.f32 %v1674_v62, 0.0 }
 0xd38   : > { %v1702_v4 = vmax.f32 %v1666_v3, 0.0 }
 0xd39   : > { %v1718_v5 = vpack.c.bf16 %v1704_v40, %v1703_v39  ;;  %2325 = vmatpush3.bf16.msra.mxu1 %v1716_v49 }
 0xd3a   : > { %v1717_v18 = vpack.c.bf16 %v1702_v4, %v1701_v44  ;;  %v2316_v7 = vpop.f32.mrb[36].mxu0  ;;  %v2411_v44 = vld [vmem:[%s2537_s23 + $0x18] sm:$0xff] }
 0xd3b   : > { %v1687_v8 = vadd.f32 %v2316_v7, %v1525_v6  ;;  %v1678_v9 = vpop.f32.mrb[37].mxu0  ;;  %v2412_v6 = vld [vmem:[%s2537_s23 + $0x8] sm:$0xff]  ;;  %v2413_v7 = vld [vmem:[%s2537_s23 + $0x10] sm:$0xff] }
 0xd3c   : > { %v1679_v58 = vadd.f32 %v1678_v9, %v1515_v57  ;;  %v2317_v10 = vpop.f32.mrb[38].mxu0  ;;  %2326 = vmatprep.subr.bf16.mxu1 %v1717_v18  ;;  %v2414_v9 = vld [vmem:[%s2537_s23] sm:$0xff] }
 0xd3d   : > { %v1690_v11 = vadd.f32 %v2317_v10, %v1530_v22  ;;  %v1681_v12 = vpop.f32.mrb[39].mxu0  ;;  %2327 = vmatpush3.bf16.msra.mxu1 %v1717_v18  ;;  %v1707_v13 = vmax.f32 %v1687_v8, 0.0 }
 0xd3e   : > { %v1682_v61 = vadd.f32 %v1681_v12, %v1520_v2  ;;  %2328 = vmatprep.subr.bf16.mxu1 %v1718_v5  ;;  %v1705_v15 = vmax.f32 %v1679_v58, 0.0 }
 0xd3f   : > { %v1708_v14 = vmax.f32 %v1690_v11, 0.0 }
 0xd40   : > { %v1706_v16 = vmax.f32 %v1682_v61, 0.0 }
 0xd41   : > { %v1720_v63 = vpack.c.bf16 %v1708_v14, %v1707_v13  ;;  %2329 = vmatpush3.bf16.msra.mxu1 %v1718_v5 }
 0xd42   : > { %v1719_v20 = vpack.c.bf16 %v1706_v16, %v1705_v15 }
 0xd44   : > { %2330 = vmatprep.subr.bf16.mxu1 %v1719_v20 }
 0xd45   : > { %2331 = vmatpush3.bf16.msra.mxu1 %v1719_v20 }
 0xd46   : > { %2332 = vmatprep.subr.bf16.mxu1 %v1720_v63 }
 0xd49   : > { %2333 = vmatpush3.bf16.msra.mxu1 %v1720_v63 }
 0xd4a   : > { %2346 = vmatprep.subr.msk.mxu1 %vm1839_vm5, %v2930_v19 }
 0xd4c   : > { %2335 = vmatmul.mubr.bf16.vlgmr.msra.gmra.mrb[20].mxu1 %v2394_v23 }
 0xd4d   : > { %2347 = vmatpush3.msk.msra.mxu1 %vm1839_vm5, %v2930_v19 }
 0xe1f   : > { %v2336_v25 = vpop.f32.mrb[20].mxu1 }
 0xe20   : > { %v1796_v26 = vadd.f32 %v2336_v25, %v1734_v21  ;;  %v1787_v27 = vpop.f32.mrb[21].mxu1 }
 0xe21   : > { %v1788_v29 = vadd.f32 %v1787_v27, %v1724_v24  ;;  %v2337_v30 = vpop.f32.mrb[22].mxu1 }
 0xe22   : > { %v1804_v32 = vsub.f32 0.0, %v1796_v26  ;;  %v1799_v33 = vadd.f32 %v2337_v30, %v1739_v28  ;;  %v1790_v34 = vpop.f32.mrb[23].mxu1 }
 0xe23   : > { %v1802_v38 = vsub.f32 0.0, %v1788_v29  ;;  %v1791_v35 = vadd.f32 %v1790_v34, %v1729_v31 }
 0xe24   : > { %v1810_v36 = vmul.f32 1.442695, %v1804_v32  ;;  %v1805_v0 = vsub.f32 0.0, %v1799_v33 }
 0xe25   : > { %v1806_v37 = vmul.f32 1.442695, %v1802_v38  ;;  %v1803_v41 = vsub.f32 0.0, %v1791_v35 }
 0xe26   : > { %2395 = vpow2.f32 %v1810_v36  ;;  %v1812_v19 = vmul.f32 1.442695, %v1805_v0 }
 0xe27   : > { %2397 = vpow2.f32 %v1806_v37  ;;  %v1808_v42 = vmul.f32 1.442695, %v1803_v41 }
 0xe28   : > { %2399 = vpow2.f32 %v1812_v19 }
 0xe29   : > { %2401 = vpow2.f32 %v1808_v42 }
 0xe30   : > { %v2396_v17 = vpop.eup %2395 }
 0xe31   : > { %v2398_v43 = vpop.eup %2397  ;;  %v1816_v45 = vadd.f32 1.0, %v2396_v17 }
 0xe32   : > { %v2400_v46 = vpop.eup %2399  ;;  %v1814_v48 = vadd.f32 1.0, %v2398_v43 }
 0xe33   : > { %v2402_v49 = vpop.eup %2401  ;;  %2403 = vrcp.f32 %v1816_v45  ;;  %v1817_v52 = vadd.f32 1.0, %v2400_v46 }
 0xe34   : > { %2405 = vrcp.f32 %v1814_v48  ;;  %v1815_v54 = vadd.f32 1.0, %v2402_v49 }
 0xe35   : > { %2407 = vrcp.f32 %v1817_v52 }
 0xe36   : > { %2409 = vrcp.f32 %v1815_v54 }
 0xe3d   : > { %v2404_v55 = vpop.eup %2403 }
 0xe3e   : > { %v2406_v56 = vpop.eup %2405  ;;  %2343 = vmatprep.mubr.msk.f32.mxu1 %vm1826_vm6, %v2404_v55 }
 0xe3f   : > { %v2408_v57 = vpop.eup %2407  ;;  %2340 = vmatprep.mubr.msk.f32.mxu0 %vm1826_vm6, %v2406_v56 }
 0xe40   : > { %v2410_v59 = vpop.eup %2409  ;;  %2344 = vmatmul.mubr.msk.f32.vlgmr.msra.gmra.mrb[24].mxu1 %vm1826_vm6, %v2408_v57 }
 0xe41   : > { %2341 = vmatmul.mubr.msk.f32.vlgmr.msra.gmra.mrb[40].mxu0 %vm1826_vm6, %v2410_v59 }
 0xf13   : > { %v2345_v60 = vpop.f32.mrb[24].mxu1 }
 0xf14   : > { %v1930_v62 = vmul.f32 %v2345_v60, %v2943_v53  ;;  %v2342_v1 = vpop.f32.mrb[40].mxu0  ;;  %v1918_v2 = vpop.f32.mrb[25].mxu1  ;;  %1945 = sbr.rel (!%p2514_p5) target bundleno = 3875 (0xf23), region = 90 }
 0xf15   : > { %v1928_v3 = vmul.f32 %v2342_v1, %v2936_v50  ;;  %v1929_v39 = vmul.f32 %v1918_v2, %v2939_v51  ;;  %v1908_v40 = vpop.f32.mrb[41].mxu0 }
 0xf16   : > { %v1934_v4 = vadd.f32 %v2411_v44, %v1930_v62  ;;  %v1927_v5 = vmul.f32 %v1908_v40, %v2934_v47 }
 0xf17   : > { %v1932_v18 = vadd.f32 %v2412_v6, %v1928_v3  ;;  %v1933_v8 = vadd.f32 %v2413_v7, %v1929_v39 }
 0xf18   : > { %1938 = vst [vmem:[%s318_s30 + $0x18] sm:$0xff] %v1934_v4  ;;  %v1931_v22 = vadd.f32 %v2414_v9, %v1927_v5 }
 0xf19   : > { %1936 = vst [vmem:[%s318_s30 + $0x8] sm:$0xff] %v1932_v18  ;;  %1937 = vst [vmem:[%s318_s30 + $0x10] sm:$0xff] %v1933_v8 }
 0xf1a   : > { %1935 = vst [vmem:[%s318_s30] sm:$0xff] %v1931_v22 }
 0xf1f   : > { %v1987_v53 = vld [vmem:[%s318_s30 + $0x18] sm:$0xff] }
 0xf20   : > { %v1983_v51 = vld [vmem:[%s318_s30 + $0x8] sm:$0xff]  ;;  %v1985_v47 = vld [vmem:[%s318_s30 + $0x10] sm:$0xff]  ;;  %1988 = vst [vmem:[%s1947_s15 + $0x30] sm:$0xff] %v1987_v53 }
 0xf21   : > { %v1981_v50 = vld [vmem:[%s318_s30] sm:$0xff]  ;;  %1984 = vst [vmem:[%s1947_s15 + $0x10] sm:$0xff] %v1983_v51  ;;  %1986 = vst [vmem:[%s1947_s15 + $0x20] sm:$0xff] %v1985_v47 }
 0xf22   : > { %1982 = vst [vmem:[%s1947_s15] sm:$0xff] %v1981_v50 }
 0xf23 PF: > { %p14_p10 = scmp.ge.s32.totalorder %s2501_s28, 4   ;;  %s3023_s24 = smov %s2433_s25 }
 0xf24   : > { %s3024_s25 = smov %s2512_s8  ;;  %s3025_s26 = smov %s2501_s28 }
 0xf25   :  { %16 = sbr.rel (!%p14_p10) target bundleno = 2 (0x2), region = 167 }

</bundles_post_ra>
